<compile_context>
chip_gen: v7x
topology: tpu7x:2x2x1
jax: 0.10.0
libtpu: 0.0.40
codegen_flags: <defaults>
</compile_context>

<pallas_src>
import functools

import jax
import jax.numpy as jnp
from jax.experimental import pallas as pl
from jax.experimental.pallas import tpu as pltpu


def _round_up(x, m):
    return ((x + m - 1) // m) * m


def lstm_linear_kernel(x_ref, wih_ref, whh_ref, b_ref, wl_ref, bl_ref,
                       y_ref, pre_scr, hist_scr):
    """Fused LSTM recurrence + linear head.

    x_ref   : (T, BP, I)  f32   time-major input, batch padded to a sublane multiple
    wih_ref : (I, 4*HP)          W_ih^T; f32 row (1, 4HP) when I == 1 (VPU path), bf16 otherwise
    whh_ref : (HP, 4*HP)  bf16  W_hh^T, zero-padded (keeps padded state exactly 0)
    b_ref   : (1, 4*HP)   f32   b_ih + b_hh, zero-padded
    wl_ref  : (HP, OP)    bf16  W_linear^T, zero-padded (OP lane-dense)
    bl_ref  : (1, OP)     f32   b_linear, zero-padded
    y_ref   : (T, BP, OP) f32   output
    pre_scr : (T, BP, 4*HP) f32 precomputed input projection + bias
    hist_scr: (T, BP, HP) bf16  h history (head applied once after the loop)
    """
    T, BP, I = x_ref.shape
    HP = whh_ref.shape[0]
    OP = wl_ref.shape[1]

    # ---- Prologue: input projection + bias for ALL timesteps, hoisted out of the loop.
    if I == 1:
        # K=1 matmul is an outer product -> do it on the VPU as a broadcast multiply.
        x2 = x_ref[...].reshape(T * BP, 1)                              # f32
        pre2 = x2 * wih_ref[...] + b_ref[...]                           # (T*BP, 4HP) f32
    else:
        x2 = x_ref[...].reshape(T * BP, I).astype(jnp.bfloat16)
        pre2 = (jnp.dot(x2, wih_ref[...], preferred_element_type=jnp.float32)
                + b_ref[...])                                           # (T*BP, 4HP) f32
    pre_scr[...] = pre2.reshape(T, BP, 4 * HP)

    # ---- Serial recurrence: h/c live in vregs as loop carries; only h @ W_hh + gate math
    # per step. HP is a multiple of 128 so each gate slice is whole vregs. T is small and
    # static, so the loop is fully unrolled for LLO scheduler visibility.
    # TODO(synk): for larger HP, stage W_hh once with pltpu.matmul_push_rhs / matmul_acc_lhs
    # instead of re-pushing the RHS every step.
    def step(t, carry):
        h_prev, c_prev = carry                                          # bf16, f32 (BP, HP)
        gates = pre_scr[t] + jnp.dot(h_prev, whh_ref[...],
                                     preferred_element_type=jnp.float32)  # (BP, 4HP) f32
        # sigmoid(x) = 0.5 * (tanh(0.5 x) + 1): one EUP push instead of exp + reciprocal.
        i_g = 0.5 * (jnp.tanh(0.5 * gates[:, 0 * HP:1 * HP]) + 1.0)
        f_g = 0.5 * (jnp.tanh(0.5 * gates[:, 1 * HP:2 * HP]) + 1.0)
        g_g = jnp.tanh(gates[:, 2 * HP:3 * HP])
        o_g = 0.5 * (jnp.tanh(0.5 * gates[:, 3 * HP:4 * HP]) + 1.0)
        c_new = f_g * c_prev + i_g * g_g                                # f32
        h_new = (o_g * jnp.tanh(c_new)).astype(jnp.bfloat16)            # bf16 feeds next matmul
        hist_scr[t] = h_new                                             # lane-dense store
        return (h_new, c_new)

    h0 = jnp.zeros((BP, HP), jnp.bfloat16)
    c0 = jnp.zeros((BP, HP), jnp.float32)
    jax.lax.fori_loop(0, T, step, (h0, c0), unroll=True)

    # ---- Epilogue: deferred lane-dense linear head over all timesteps at once.
    h2 = hist_scr[...].reshape(T * BP, HP)                              # bf16
    y2 = (jnp.dot(h2, wl_ref[...], preferred_element_type=jnp.float32)
          + bl_ref[...])                                                # (T*BP, OP) f32
    y_ref[...] = y2.reshape(T, BP, OP).astype(y_ref.dtype)


def prepare_lstm_params(weight_ih, weight_hh, bias_ih, bias_hh, weight_lin, bias_lin):
    """One-time re-layout of PyTorch-convention LSTM/Linear weights (hoisted out of the
    per-call forward path): pad H -> HP (vreg multiple), O -> OP (lane-dense), transpose,
    fuse biases, and cast MXU operands to bf16."""
    H = weight_hh.shape[1]
    I = weight_ih.shape[1]
    O = weight_lin.shape[0]
    HP = _round_up(H, 128)
    OP = _round_up(O, 128)
    f32, bf16 = jnp.float32, jnp.bfloat16

    # W_ih: (4H, I) -> (4, H, I) -> pad gate dim -> (I, 4HP)
    wih = weight_ih.reshape(4, H, I)
    wih = jnp.pad(wih, ((0, 0), (0, HP - H), (0, 0))).reshape(4 * HP, I)
    # I == 1 uses the VPU broadcast path (keep f32); I > 1 uses the MXU (bf16).
    wih_t = wih.T.astype(f32 if I == 1 else bf16)                       # (I, 4HP)

    # W_hh: (4H, H) -> (4, H, H) -> pad gate & hidden dims -> (HP, 4HP) bf16
    whh = weight_hh.reshape(4, H, H)
    whh = jnp.pad(whh, ((0, 0), (0, HP - H), (0, HP - H))).reshape(4 * HP, HP)
    whh_t = whh.T.astype(bf16)                                          # (HP, 4HP)

    # biases: (4H,) -> (1, 4HP) f32 (zero pad keeps padded gate columns inert)
    b = (bias_ih + bias_hh).reshape(4, H)
    b = jnp.pad(b, ((0, 0), (0, HP - H))).reshape(1, 4 * HP).astype(f32)

    # Linear head: (O, H) -> (HP, OP) bf16, (O,) -> (1, OP) f32
    wl_t = jnp.pad(weight_lin, ((0, OP - O), (0, HP - H))).T.astype(bf16)
    bl = jnp.pad(bias_lin, (0, OP - O)).reshape(1, OP).astype(f32)

    return wih_t, whh_t, b, wl_t, bl


@functools.partial(jax.jit, static_argnames=("out_size",))
def lstm_memory_forward(x, wih_t, whh_t, b, wl_t, bl, *, out_size):
    """x: (B, T, I) float32, batch-first (PyTorch convention). Returns (B, T, out_size)."""
    B, T, I = x.shape
    HP = whh_t.shape[0]
    OP = wl_t.shape[1]
    BP = _round_up(max(B, 8), 8)    # full sublane groups -> unmasked vreg ops
    f32 = jnp.float32

    # Time-major, batch-padded input (zero rows stay inert and are sliced off below).
    x_tm = jnp.transpose(x, (1, 0, 2)).astype(f32)                      # (T, B, I)
    x_tm = jnp.pad(x_tm, ((0, 0), (0, BP - B), (0, 0)))                 # (T, BP, I)

    vmem = pl.BlockSpec(memory_space=pltpu.MemorySpace.VMEM)
    # TODO(synk): for non-toy T*B, switch to a time-tiled grid (BlockSpec over T marked
    # "arbitrary", h/c carried in scratch across grid steps) so x / y stream through
    # double-buffered VMEM instead of being fully resident (v7x's 64 MiB VMEM hits first),
    # add a "parallel" batch grid axis for v7x's 2 TensorCores, and emit a lane-dense
    # narrow y layout instead of OP=128 per scalar output.
    y_tm = pl.pallas_call(
        lstm_linear_kernel,
        out_shape=jax.ShapeDtypeStruct((T, BP, OP), f32),
        in_specs=[vmem] * 6,
        out_specs=vmem,
        scratch_shapes=[
            pltpu.VMEM((T, BP, 4 * HP), f32),        # precomputed input gates
            pltpu.VMEM((T, BP, HP), jnp.bfloat16),   # h history for the deferred head
        ],
        compiler_params=pltpu.CompilerParams(vmem_limit_bytes=32 * 1024 * 1024),
    )(x_tm, wih_t, whh_t, b, wl_t, bl)

    return jnp.transpose(y_tm, (1, 0, 2))[:B, :, :out_size]             # (B, T, O)


def _reference_forward(x, weight_ih, weight_hh, bias_ih, bias_hh,
                       weight_lin, bias_lin):
    """Pure-JAX f32 reference matching torch.nn.LSTM(batch_first=True) + Linear."""
    B, T, I = x.shape
    H = weight_hh.shape[1]
    b = bias_ih + bias_hh

    def step(carry, x_t):
        h, c = carry
        gates = x_t @ weight_ih.T + h @ weight_hh.T + b
        i = jax.nn.sigmoid(gates[:, 0 * H:1 * H])
        f = jax.nn.sigmoid(gates[:, 1 * H:2 * H])
        g = jnp.tanh(gates[:, 2 * H:3 * H])
        o = jax.nn.sigmoid(gates[:, 3 * H:4 * H])
        c = f * c + i * g
        h = o * jnp.tanh(c)
        return (h, c), h

    h0 = jnp.zeros((B, H), jnp.float32)
    c0 = jnp.zeros((B, H), jnp.float32)
    _, hs = jax.lax.scan(step, (h0, c0), jnp.transpose(x, (1, 0, 2)))
    hs = jnp.transpose(hs, (1, 0, 2))               # (B, T, H)
    return hs @ weight_lin.T + bias_lin


if __name__ == "__main__":
    # Shapes implied by the module: LSTMMemory(hidden_size=32, input_size=1, output_size=1),
    # batch=2, seq=8.
    B, T, I, H, O = 2, 8, 1, 32, 1

    key = jax.random.PRNGKey(0)
    k = jax.random.split(key, 7)
    scale = 1.0 / jnp.sqrt(jnp.float32(H))
    weight_ih = jax.random.uniform(k[0], (4 * H, I), jnp.float32, -scale, scale)
    weight_hh = jax.random.uniform(k[1], (4 * H, H), jnp.float32, -scale, scale)
    bias_ih = jax.random.uniform(k[2], (4 * H,), jnp.float32, -scale, scale)
    bias_hh = jax.random.uniform(k[3], (4 * H,), jnp.float32, -scale, scale)
    weight_lin = jax.random.uniform(k[4], (O, H), jnp.float32, -scale, scale)
    bias_lin = jax.random.uniform(k[5], (O,), jnp.float32, -scale, scale)
    x = jax.random.normal(k[6], (B, T, I), jnp.float32)

    # One-time weight re-layout (outside the per-call forward path).
    params = prepare_lstm_params(weight_ih, weight_hh, bias_ih, bias_hh,
                                 weight_lin, bias_lin)
    params = jax.block_until_ready(params)

    y = lstm_memory_forward(x, *params, out_size=O)
    y = jax.block_until_ready(y)

    y_ref = _reference_forward(x, weight_ih, weight_hh, bias_ih, bias_hh,
                               weight_lin, bias_lin)
    assert y.shape == (B, T, O), y.shape
    # Tolerance relaxed vs. pure-f32: recurrence / head matmuls use bf16 operands
    # (f32 accumulation), as recommended by the perf review.
    err = float(jnp.max(jnp.abs(y - y_ref)))
    assert jnp.allclose(y, y_ref, atol=2e-2, rtol=2e-2), err

    print("KERNEL_OK")
</pallas_src>

<mosaic_0001>
module attributes {stable_mosaic.version = 11 : i64} {
  func.func @lstm_linear_kernel(%arg0: memref<8x8x1xf32, #tpu.memory_space<vmem>>, %arg1: memref<1x512xf32, #tpu.memory_space<vmem>>, %arg2: memref<128x512xbf16, #tpu.memory_space<vmem>>, %arg3: memref<1x512xf32, #tpu.memory_space<vmem>>, %arg4: memref<128x128xbf16, #tpu.memory_space<vmem>>, %arg5: memref<1x128xf32, #tpu.memory_space<vmem>>, %arg6: memref<8x8x128xf32, #tpu.memory_space<vmem>>, %arg7: memref<8x8x512xf32, #tpu.memory_space<vmem>>, %arg8: memref<8x8x128xbf16, #tpu.memory_space<vmem>>) attributes {dimension_semantics = [], scalar_prefetch = 0 : i64, scratch_operands = 2 : i64, tpu.core_type = #tpu.core_type<tc>} {
    %c0 = arith.constant 0 : index
    %c0_0 = arith.constant 0 : index
    %c0_1 = arith.constant 0 : index
    %0 = vector.load %arg0[%c0, %c0_0, %c0_1] : memref<8x8x1xf32, #tpu.memory_space<vmem>>, vector<8x8x1xf32>
    %1 = vector.shape_cast %0 : vector<8x8x1xf32> to vector<64x1xf32>
    %c0_2 = arith.constant 0 : index
    %c0_3 = arith.constant 0 : index
    %2 = vector.load %arg1[%c0_2, %c0_3] : memref<1x512xf32, #tpu.memory_space<vmem>>, vector<1x512xf32>
    %3 = vector.broadcast %1 : vector<64x1xf32> to vector<64x512xf32>
    %4 = vector.broadcast %2 : vector<1x512xf32> to vector<64x512xf32>
    %5 = arith.mulf %3, %4 : vector<64x512xf32>
    %c0_4 = arith.constant 0 : index
    %c0_5 = arith.constant 0 : index
    %6 = vector.load %arg3[%c0_4, %c0_5] : memref<1x512xf32, #tpu.memory_space<vmem>>, vector<1x512xf32>
    %7 = vector.broadcast %6 : vector<1x512xf32> to vector<64x512xf32>
    %8 = arith.addf %5, %7 : vector<64x512xf32>
    %9 = vector.shape_cast %8 : vector<64x512xf32> to vector<8x8x512xf32>
    %c0_6 = arith.constant 0 : index
    %c0_7 = arith.constant 0 : index
    %c0_8 = arith.constant 0 : index
    %10 = vector.load %arg7[%c0_6, %c0_7, %c0_8] : memref<8x8x512xf32, #tpu.memory_space<vmem>>, vector<8x8x512xf32>
    tpu.vector_store %arg7[%c0_6, %c0_7, %c0_8], %9 {strides = array<i32>} : memref<8x8x512xf32, #tpu.memory_space<vmem>>, vector<8x8x512xf32>,
    %cst = arith.constant 0.000000e+00 : bf16
    %11 = vector.broadcast %cst : bf16 to vector<8x128xbf16>
    %cst_9 = arith.constant 0.000000e+00 : f32
    %12 = vector.broadcast %cst_9 : f32 to vector<8x128xf32>
    %c0_i32 = arith.constant 0 : i32
    %13 = arith.index_cast %c0_i32 : i32 to index
    %c0_10 = arith.constant 0 : index
    %c0_11 = arith.constant 0 : index
    %14 = vector.load %arg7[%13, %c0_10, %c0_11] : memref<8x8x512xf32, #tpu.memory_space<vmem>>, vector<1x8x512xf32>
    %15 = vector.shape_cast %14 : vector<1x8x512xf32> to vector<8x512xf32>
    %c0_12 = arith.constant 0 : index
    %c0_13 = arith.constant 0 : index
    %16 = vector.load %arg2[%c0_12, %c0_13] : memref<128x512xbf16, #tpu.memory_space<vmem>>, vector<128x512xbf16>
    %cst_14 = arith.constant dense<0.000000e+00> : vector<8x512xf32>
    %17 = tpu.matmul %11, %16, %cst_14 {dimension_numbers = #tpu.dot_dimension_numbers<[1], [0], [0], [1], [0, 0, 1, 1], [], []>} : vector<8x128xbf16>, vector<128x512xbf16>, vector<8x512xf32> -> vector<8x512xf32>
    %18 = arith.addf %15, %17 : vector<8x512xf32>
    %19 = vector.extract_strided_slice %18 {offsets = [0, 0], sizes = [8, 128], strides = [1, 1]} : vector<8x512xf32> to vector<8x128xf32>
    %cst_15 = arith.constant 5.000000e-01 : f32
    %20 = vector.broadcast %cst_15 : f32 to vector<8x128xf32>
    %21 = arith.mulf %20, %19 : vector<8x128xf32>
    %22 = math.tanh %21 : vector<8x128xf32>
    %cst_16 = arith.constant 1.000000e+00 : f32
    %23 = vector.broadcast %cst_16 : f32 to vector<8x128xf32>
    %24 = arith.addf %22, %23 : vector<8x128xf32>
    %cst_17 = arith.constant 5.000000e-01 : f32
    %25 = vector.broadcast %cst_17 : f32 to vector<8x128xf32>
    %26 = arith.mulf %25, %24 : vector<8x128xf32>
    %27 = vector.extract_strided_slice %18 {offsets = [0, 128], sizes = [8, 128], strides = [1, 1]} : vector<8x512xf32> to vector<8x128xf32>
    %cst_18 = arith.constant 5.000000e-01 : f32
    %28 = vector.broadcast %cst_18 : f32 to vector<8x128xf32>
    %29 = arith.mulf %28, %27 : vector<8x128xf32>
    %30 = math.tanh %29 : vector<8x128xf32>
    %cst_19 = arith.constant 1.000000e+00 : f32
    %31 = vector.broadcast %cst_19 : f32 to vector<8x128xf32>
    %32 = arith.addf %30, %31 : vector<8x128xf32>
    %cst_20 = arith.constant 5.000000e-01 : f32
    %33 = vector.broadcast %cst_20 : f32 to vector<8x128xf32>
    %34 = arith.mulf %33, %32 : vector<8x128xf32>
    %35 = vector.extract_strided_slice %18 {offsets = [0, 256], sizes = [8, 128], strides = [1, 1]} : vector<8x512xf32> to vector<8x128xf32>
    %36 = math.tanh %35 : vector<8x128xf32>
    %37 = vector.extract_strided_slice %18 {offsets = [0, 384], sizes = [8, 128], strides = [1, 1]} : vector<8x512xf32> to vector<8x128xf32>
    %cst_21 = arith.constant 5.000000e-01 : f32
    %38 = vector.broadcast %cst_21 : f32 to vector<8x128xf32>
    %39 = arith.mulf %38, %37 : vector<8x128xf32>
    %40 = math.tanh %39 : vector<8x128xf32>
    %cst_22 = arith.constant 1.000000e+00 : f32
    %41 = vector.broadcast %cst_22 : f32 to vector<8x128xf32>
    %42 = arith.addf %40, %41 : vector<8x128xf32>
    %cst_23 = arith.constant 5.000000e-01 : f32
    %43 = vector.broadcast %cst_23 : f32 to vector<8x128xf32>
    %44 = arith.mulf %43, %42 : vector<8x128xf32>
    %45 = arith.mulf %34, %12 : vector<8x128xf32>
    %46 = arith.mulf %26, %36 : vector<8x128xf32>
    %47 = arith.addf %45, %46 : vector<8x128xf32>
    %48 = math.tanh %47 : vector<8x128xf32>
    %49 = arith.mulf %44, %48 : vector<8x128xf32>
    %50 = arith.truncf %49 : vector<8x128xf32> to vector<8x128xbf16>
    %51 = arith.index_cast %c0_i32 : i32 to index
    %c0_24 = arith.constant 0 : index
    %c0_25 = arith.constant 0 : index
    %52 = vector.load %arg8[%51, %c0_24, %c0_25] : memref<8x8x128xbf16, #tpu.memory_space<vmem>>, vector<1x8x128xbf16>
    %53 = vector.shape_cast %52 : vector<1x8x128xbf16> to vector<8x128xbf16>
    %54 = vector.shape_cast %50 : vector<8x128xbf16> to vector<1x8x128xbf16>
    tpu.vector_store %arg8[%51, %c0_24, %c0_25], %54 {strides = array<i32>} : memref<8x8x128xbf16, #tpu.memory_space<vmem>>, vector<1x8x128xbf16>,
    %c1_i32 = arith.constant 1 : i32
    %55 = arith.index_cast %c1_i32 : i32 to index
    %c0_26 = arith.constant 0 : index
    %c0_27 = arith.constant 0 : index
    %56 = vector.load %arg7[%55, %c0_26, %c0_27] : memref<8x8x512xf32, #tpu.memory_space<vmem>>, vector<1x8x512xf32>
    %57 = vector.shape_cast %56 : vector<1x8x512xf32> to vector<8x512xf32>
    %c0_28 = arith.constant 0 : index
    %c0_29 = arith.constant 0 : index
    %58 = vector.load %arg2[%c0_28, %c0_29] : memref<128x512xbf16, #tpu.memory_space<vmem>>, vector<128x512xbf16>
    %cst_30 = arith.constant dense<0.000000e+00> : vector<8x512xf32>
    %59 = tpu.matmul %50, %58, %cst_30 {dimension_numbers = #tpu.dot_dimension_numbers<[1], [0], [0], [1], [0, 0, 1, 1], [], []>} : vector<8x128xbf16>, vector<128x512xbf16>, vector<8x512xf32> -> vector<8x512xf32>
    %60 = arith.addf %57, %59 : vector<8x512xf32>
    %61 = vector.extract_strided_slice %60 {offsets = [0, 0], sizes = [8, 128], strides = [1, 1]} : vector<8x512xf32> to vector<8x128xf32>
    %cst_31 = arith.constant 5.000000e-01 : f32
    %62 = vector.broadcast %cst_31 : f32 to vector<8x128xf32>
    %63 = arith.mulf %62, %61 : vector<8x128xf32>
    %64 = math.tanh %63 : vector<8x128xf32>
    %cst_32 = arith.constant 1.000000e+00 : f32
    %65 = vector.broadcast %cst_32 : f32 to vector<8x128xf32>
    %66 = arith.addf %64, %65 : vector<8x128xf32>
    %cst_33 = arith.constant 5.000000e-01 : f32
    %67 = vector.broadcast %cst_33 : f32 to vector<8x128xf32>
    %68 = arith.mulf %67, %66 : vector<8x128xf32>
    %69 = vector.extract_strided_slice %60 {offsets = [0, 128], sizes = [8, 128], strides = [1, 1]} : vector<8x512xf32> to vector<8x128xf32>
    %cst_34 = arith.constant 5.000000e-01 : f32
    %70 = vector.broadcast %cst_34 : f32 to vector<8x128xf32>
    %71 = arith.mulf %70, %69 : vector<8x128xf32>
    %72 = math.tanh %71 : vector<8x128xf32>
    %cst_35 = arith.constant 1.000000e+00 : f32
    %73 = vector.broadcast %cst_35 : f32 to vector<8x128xf32>
    %74 = arith.addf %72, %73 : vector<8x128xf32>
    %cst_36 = arith.constant 5.000000e-01 : f32
    %75 = vector.broadcast %cst_36 : f32 to vector<8x128xf32>
    %76 = arith.mulf %75, %74 : vector<8x128xf32>
    %77 = vector.extract_strided_slice %60 {offsets = [0, 256], sizes = [8, 128], strides = [1, 1]} : vector<8x512xf32> to vector<8x128xf32>
    %78 = math.tanh %77 : vector<8x128xf32>
    %79 = vector.extract_strided_slice %60 {offsets = [0, 384], sizes = [8, 128], strides = [1, 1]} : vector<8x512xf32> to vector<8x128xf32>
    %cst_37 = arith.constant 5.000000e-01 : f32
    %80 = vector.broadcast %cst_37 : f32 to vector<8x128xf32>
    %81 = arith.mulf %80, %79 : vector<8x128xf32>
    %82 = math.tanh %81 : vector<8x128xf32>
    %cst_38 = arith.constant 1.000000e+00 : f32
    %83 = vector.broadcast %cst_38 : f32 to vector<8x128xf32>
    %84 = arith.addf %82, %83 : vector<8x128xf32>
    %cst_39 = arith.constant 5.000000e-01 : f32
    %85 = vector.broadcast %cst_39 : f32 to vector<8x128xf32>
    %86 = arith.mulf %85, %84 : vector<8x128xf32>
    %87 = arith.mulf %76, %47 : vector<8x128xf32>
    %88 = arith.mulf %68, %78 : vector<8x128xf32>
    %89 = arith.addf %87, %88 : vector<8x128xf32>
    %90 = math.tanh %89 : vector<8x128xf32>
    %91 = arith.mulf %86, %90 : vector<8x128xf32>
    %92 = arith.truncf %91 : vector<8x128xf32> to vector<8x128xbf16>
    %93 = arith.index_cast %c1_i32 : i32 to index
    %c0_40 = arith.constant 0 : index
    %c0_41 = arith.constant 0 : index
    %94 = vector.load %arg8[%93, %c0_40, %c0_41] : memref<8x8x128xbf16, #tpu.memory_space<vmem>>, vector<1x8x128xbf16>
    %95 = vector.shape_cast %94 : vector<1x8x128xbf16> to vector<8x128xbf16>
    %96 = vector.shape_cast %92 : vector<8x128xbf16> to vector<1x8x128xbf16>
    tpu.vector_store %arg8[%93, %c0_40, %c0_41], %96 {strides = array<i32>} : memref<8x8x128xbf16, #tpu.memory_space<vmem>>, vector<1x8x128xbf16>,
    %c2_i32 = arith.constant 2 : i32
    %97 = arith.index_cast %c2_i32 : i32 to index
    %c0_42 = arith.constant 0 : index
    %c0_43 = arith.constant 0 : index
    %98 = vector.load %arg7[%97, %c0_42, %c0_43] : memref<8x8x512xf32, #tpu.memory_space<vmem>>, vector<1x8x512xf32>
    %99 = vector.shape_cast %98 : vector<1x8x512xf32> to vector<8x512xf32>
    %c0_44 = arith.constant 0 : index
    %c0_45 = arith.constant 0 : index
    %100 = vector.load %arg2[%c0_44, %c0_45] : memref<128x512xbf16, #tpu.memory_space<vmem>>, vector<128x512xbf16>
    %cst_46 = arith.constant dense<0.000000e+00> : vector<8x512xf32>
    %101 = tpu.matmul %92, %100, %cst_46 {dimension_numbers = #tpu.dot_dimension_numbers<[1], [0], [0], [1], [0, 0, 1, 1], [], []>} : vector<8x128xbf16>, vector<128x512xbf16>, vector<8x512xf32> -> vector<8x512xf32>
    %102 = arith.addf %99, %101 : vector<8x512xf32>
    %103 = vector.extract_strided_slice %102 {offsets = [0, 0], sizes = [8, 128], strides = [1, 1]} : vector<8x512xf32> to vector<8x128xf32>
    %cst_47 = arith.constant 5.000000e-01 : f32
    %104 = vector.broadcast %cst_47 : f32 to vector<8x128xf32>
    %105 = arith.mulf %104, %103 : vector<8x128xf32>
    %106 = math.tanh %105 : vector<8x128xf32>
    %cst_48 = arith.constant 1.000000e+00 : f32
    %107 = vector.broadcast %cst_48 : f32 to vector<8x128xf32>
    %108 = arith.addf %106, %107 : vector<8x128xf32>
    %cst_49 = arith.constant 5.000000e-01 : f32
    %109 = vector.broadcast %cst_49 : f32 to vector<8x128xf32>
    %110 = arith.mulf %109, %108 : vector<8x128xf32>
    %111 = vector.extract_strided_slice %102 {offsets = [0, 128], sizes = [8, 128], strides = [1, 1]} : vector<8x512xf32> to vector<8x128xf32>
    %cst_50 = arith.constant 5.000000e-01 : f32
    %112 = vector.broadcast %cst_50 : f32 to vector<8x128xf32>
    %113 = arith.mulf %112, %111 : vector<8x128xf32>
    %114 = math.tanh %113 : vector<8x128xf32>
    %cst_51 = arith.constant 1.000000e+00 : f32
    %115 = vector.broadcast %cst_51 : f32 to vector<8x128xf32>
    %116 = arith.addf %114, %115 : vector<8x128xf32>
    %cst_52 = arith.constant 5.000000e-01 : f32
    %117 = vector.broadcast %cst_52 : f32 to vector<8x128xf32>
    %118 = arith.mulf %117, %116 : vector<8x128xf32>
    %119 = vector.extract_strided_slice %102 {offsets = [0, 256], sizes = [8, 128], strides = [1, 1]} : vector<8x512xf32> to vector<8x128xf32>
    %120 = math.tanh %119 : vector<8x128xf32>
    %121 = vector.extract_strided_slice %102 {offsets = [0, 384], sizes = [8, 128], strides = [1, 1]} : vector<8x512xf32> to vector<8x128xf32>
    %cst_53 = arith.constant 5.000000e-01 : f32
    %122 = vector.broadcast %cst_53 : f32 to vector<8x128xf32>
    %123 = arith.mulf %122, %121 : vector<8x128xf32>
    %124 = math.tanh %123 : vector<8x128xf32>
    %cst_54 = arith.constant 1.000000e+00 : f32
    %125 = vector.broadcast %cst_54 : f32 to vector<8x128xf32>
    %126 = arith.addf %124, %125 : vector<8x128xf32>
    %cst_55 = arith.constant 5.000000e-01 : f32
    %127 = vector.broadcast %cst_55 : f32 to vector<8x128xf32>
    %128 = arith.mulf %127, %126 : vector<8x128xf32>
    %129 = arith.mulf %118, %89 : vector<8x128xf32>
    %130 = arith.mulf %110, %120 : vector<8x128xf32>
    %131 = arith.addf %129, %130 : vector<8x128xf32>
    %132 = math.tanh %131 : vector<8x128xf32>
    %133 = arith.mulf %128, %132 : vector<8x128xf32>
    %134 = arith.truncf %133 : vector<8x128xf32> to vector<8x128xbf16>
    %135 = arith.index_cast %c2_i32 : i32 to index
    %c0_56 = arith.constant 0 : index
    %c0_57 = arith.constant 0 : index
    %136 = vector.load %arg8[%135, %c0_56, %c0_57] : memref<8x8x128xbf16, #tpu.memory_space<vmem>>, vector<1x8x128xbf16>
    %137 = vector.shape_cast %136 : vector<1x8x128xbf16> to vector<8x128xbf16>
    %138 = vector.shape_cast %134 : vector<8x128xbf16> to vector<1x8x128xbf16>
    tpu.vector_store %arg8[%135, %c0_56, %c0_57], %138 {strides = array<i32>} : memref<8x8x128xbf16, #tpu.memory_space<vmem>>, vector<1x8x128xbf16>,
    %c3_i32 = arith.constant 3 : i32
    %139 = arith.index_cast %c3_i32 : i32 to index
    %c0_58 = arith.constant 0 : index
    %c0_59 = arith.constant 0 : index
    %140 = vector.load %arg7[%139, %c0_58, %c0_59] : memref<8x8x512xf32, #tpu.memory_space<vmem>>, vector<1x8x512xf32>
    %141 = vector.shape_cast %140 : vector<1x8x512xf32> to vector<8x512xf32>
    %c0_60 = arith.constant 0 : index
    %c0_61 = arith.constant 0 : index
    %142 = vector.load %arg2[%c0_60, %c0_61] : memref<128x512xbf16, #tpu.memory_space<vmem>>, vector<128x512xbf16>
    %cst_62 = arith.constant dense<0.000000e+00> : vector<8x512xf32>
    %143 = tpu.matmul %134, %142, %cst_62 {dimension_numbers = #tpu.dot_dimension_numbers<[1], [0], [0], [1], [0, 0, 1, 1], [], []>} : vector<8x128xbf16>, vector<128x512xbf16>, vector<8x512xf32> -> vector<8x512xf32>
    %144 = arith.addf %141, %143 : vector<8x512xf32>
    %145 = vector.extract_strided_slice %144 {offsets = [0, 0], sizes = [8, 128], strides = [1, 1]} : vector<8x512xf32> to vector<8x128xf32>
    %cst_63 = arith.constant 5.000000e-01 : f32
    %146 = vector.broadcast %cst_63 : f32 to vector<8x128xf32>
    %147 = arith.mulf %146, %145 : vector<8x128xf32>
    %148 = math.tanh %147 : vector<8x128xf32>
    %cst_64 = arith.constant 1.000000e+00 : f32
    %149 = vector.broadcast %cst_64 : f32 to vector<8x128xf32>
    %150 = arith.addf %148, %149 : vector<8x128xf32>
    %cst_65 = arith.constant 5.000000e-01 : f32
    %151 = vector.broadcast %cst_65 : f32 to vector<8x128xf32>
    %152 = arith.mulf %151, %150 : vector<8x128xf32>
    %153 = vector.extract_strided_slice %144 {offsets = [0, 128], sizes = [8, 128], strides = [1, 1]} : vector<8x512xf32> to vector<8x128xf32>
    %cst_66 = arith.constant 5.000000e-01 : f32
    %154 = vector.broadcast %cst_66 : f32 to vector<8x128xf32>
    %155 = arith.mulf %154, %153 : vector<8x128xf32>
    %156 = math.tanh %155 : vector<8x128xf32>
    %cst_67 = arith.constant 1.000000e+00 : f32
    %157 = vector.broadcast %cst_67 : f32 to vector<8x128xf32>
    %158 = arith.addf %156, %157 : vector<8x128xf32>
    %cst_68 = arith.constant 5.000000e-01 : f32
    %159 = vector.broadcast %cst_68 : f32 to vector<8x128xf32>
    %160 = arith.mulf %159, %158 : vector<8x128xf32>
    %161 = vector.extract_strided_slice %144 {offsets = [0, 256], sizes = [8, 128], strides = [1, 1]} : vector<8x512xf32> to vector<8x128xf32>
    %162 = math.tanh %161 : vector<8x128xf32>
    %163 = vector.extract_strided_slice %144 {offsets = [0, 384], sizes = [8, 128], strides = [1, 1]} : vector<8x512xf32> to vector<8x128xf32>
    %cst_69 = arith.constant 5.000000e-01 : f32
    %164 = vector.broadcast %cst_69 : f32 to vector<8x128xf32>
    %165 = arith.mulf %164, %163 : vector<8x128xf32>
    %166 = math.tanh %165 : vector<8x128xf32>
    %cst_70 = arith.constant 1.000000e+00 : f32
    %167 = vector.broadcast %cst_70 : f32 to vector<8x128xf32>
    %168 = arith.addf %166, %167 : vector<8x128xf32>
    %cst_71 = arith.constant 5.000000e-01 : f32
    %169 = vector.broadcast %cst_71 : f32 to vector<8x128xf32>
    %170 = arith.mulf %169, %168 : vector<8x128xf32>
    %171 = arith.mulf %160, %131 : vector<8x128xf32>
    %172 = arith.mulf %152, %162 : vector<8x128xf32>
    %173 = arith.addf %171, %172 : vector<8x128xf32>
    %174 = math.tanh %173 : vector<8x128xf32>
    %175 = arith.mulf %170, %174 : vector<8x128xf32>
    %176 = arith.truncf %175 : vector<8x128xf32> to vector<8x128xbf16>
    %177 = arith.index_cast %c3_i32 : i32 to index
    %c0_72 = arith.constant 0 : index
    %c0_73 = arith.constant 0 : index
    %178 = vector.load %arg8[%177, %c0_72, %c0_73] : memref<8x8x128xbf16, #tpu.memory_space<vmem>>, vector<1x8x128xbf16>
    %179 = vector.shape_cast %178 : vector<1x8x128xbf16> to vector<8x128xbf16>
    %180 = vector.shape_cast %176 : vector<8x128xbf16> to vector<1x8x128xbf16>
    tpu.vector_store %arg8[%177, %c0_72, %c0_73], %180 {strides = array<i32>} : memref<8x8x128xbf16, #tpu.memory_space<vmem>>, vector<1x8x128xbf16>,
    %c4_i32 = arith.constant 4 : i32
    %181 = arith.index_cast %c4_i32 : i32 to index
    %c0_74 = arith.constant 0 : index
    %c0_75 = arith.constant 0 : index
    %182 = vector.load %arg7[%181, %c0_74, %c0_75] : memref<8x8x512xf32, #tpu.memory_space<vmem>>, vector<1x8x512xf32>
    %183 = vector.shape_cast %182 : vector<1x8x512xf32> to vector<8x512xf32>
    %c0_76 = arith.constant 0 : index
    %c0_77 = arith.constant 0 : index
    %184 = vector.load %arg2[%c0_76, %c0_77] : memref<128x512xbf16, #tpu.memory_space<vmem>>, vector<128x512xbf16>
    %cst_78 = arith.constant dense<0.000000e+00> : vector<8x512xf32>
    %185 = tpu.matmul %176, %184, %cst_78 {dimension_numbers = #tpu.dot_dimension_numbers<[1], [0], [0], [1], [0, 0, 1, 1], [], []>} : vector<8x128xbf16>, vector<128x512xbf16>, vector<8x512xf32> -> vector<8x512xf32>
    %186 = arith.addf %183, %185 : vector<8x512xf32>
    %187 = vector.extract_strided_slice %186 {offsets = [0, 0], sizes = [8, 128], strides = [1, 1]} : vector<8x512xf32> to vector<8x128xf32>
    %cst_79 = arith.constant 5.000000e-01 : f32
    %188 = vector.broadcast %cst_79 : f32 to vector<8x128xf32>
    %189 = arith.mulf %188, %187 : vector<8x128xf32>
    %190 = math.tanh %189 : vector<8x128xf32>
    %cst_80 = arith.constant 1.000000e+00 : f32
    %191 = vector.broadcast %cst_80 : f32 to vector<8x128xf32>
    %192 = arith.addf %190, %191 : vector<8x128xf32>
    %cst_81 = arith.constant 5.000000e-01 : f32
    %193 = vector.broadcast %cst_81 : f32 to vector<8x128xf32>
    %194 = arith.mulf %193, %192 : vector<8x128xf32>
    %195 = vector.extract_strided_slice %186 {offsets = [0, 128], sizes = [8, 128], strides = [1, 1]} : vector<8x512xf32> to vector<8x128xf32>
    %cst_82 = arith.constant 5.000000e-01 : f32
    %196 = vector.broadcast %cst_82 : f32 to vector<8x128xf32>
    %197 = arith.mulf %196, %195 : vector<8x128xf32>
    %198 = math.tanh %197 : vector<8x128xf32>
    %cst_83 = arith.constant 1.000000e+00 : f32
    %199 = vector.broadcast %cst_83 : f32 to vector<8x128xf32>
    %200 = arith.addf %198, %199 : vector<8x128xf32>
    %cst_84 = arith.constant 5.000000e-01 : f32
    %201 = vector.broadcast %cst_84 : f32 to vector<8x128xf32>
    %202 = arith.mulf %201, %200 : vector<8x128xf32>
    %203 = vector.extract_strided_slice %186 {offsets = [0, 256], sizes = [8, 128], strides = [1, 1]} : vector<8x512xf32> to vector<8x128xf32>
    %204 = math.tanh %203 : vector<8x128xf32>
    %205 = vector.extract_strided_slice %186 {offsets = [0, 384], sizes = [8, 128], strides = [1, 1]} : vector<8x512xf32> to vector<8x128xf32>
    %cst_85 = arith.constant 5.000000e-01 : f32
    %206 = vector.broadcast %cst_85 : f32 to vector<8x128xf32>
    %207 = arith.mulf %206, %205 : vector<8x128xf32>
    %208 = math.tanh %207 : vector<8x128xf32>
    %cst_86 = arith.constant 1.000000e+00 : f32
    %209 = vector.broadcast %cst_86 : f32 to vector<8x128xf32>
    %210 = arith.addf %208, %209 : vector<8x128xf32>
    %cst_87 = arith.constant 5.000000e-01 : f32
    %211 = vector.broadcast %cst_87 : f32 to vector<8x128xf32>
    %212 = arith.mulf %211, %210 : vector<8x128xf32>
    %213 = arith.mulf %202, %173 : vector<8x128xf32>
    %214 = arith.mulf %194, %204 : vector<8x128xf32>
    %215 = arith.addf %213, %214 : vector<8x128xf32>
    %216 = math.tanh %215 : vector<8x128xf32>
    %217 = arith.mulf %212, %216 : vector<8x128xf32>
    %218 = arith.truncf %217 : vector<8x128xf32> to vector<8x128xbf16>
    %219 = arith.index_cast %c4_i32 : i32 to index
    %c0_88 = arith.constant 0 : index
    %c0_89 = arith.constant 0 : index
    %220 = vector.load %arg8[%219, %c0_88, %c0_89] : memref<8x8x128xbf16, #tpu.memory_space<vmem>>, vector<1x8x128xbf16>
    %221 = vector.shape_cast %220 : vector<1x8x128xbf16> to vector<8x128xbf16>
    %222 = vector.shape_cast %218 : vector<8x128xbf16> to vector<1x8x128xbf16>
    tpu.vector_store %arg8[%219, %c0_88, %c0_89], %222 {strides = array<i32>} : memref<8x8x128xbf16, #tpu.memory_space<vmem>>, vector<1x8x128xbf16>,
    %c5_i32 = arith.constant 5 : i32
    %223 = arith.index_cast %c5_i32 : i32 to index
    %c0_90 = arith.constant 0 : index
    %c0_91 = arith.constant 0 : index
    %224 = vector.load %arg7[%223, %c0_90, %c0_91] : memref<8x8x512xf32, #tpu.memory_space<vmem>>, vector<1x8x512xf32>
    %225 = vector.shape_cast %224 : vector<1x8x512xf32> to vector<8x512xf32>
    %c0_92 = arith.constant 0 : index
    %c0_93 = arith.constant 0 : index
    %226 = vector.load %arg2[%c0_92, %c0_93] : memref<128x512xbf16, #tpu.memory_space<vmem>>, vector<128x512xbf16>
    %cst_94 = arith.constant dense<0.000000e+00> : vector<8x512xf32>
    %227 = tpu.matmul %218, %226, %cst_94 {dimension_numbers = #tpu.dot_dimension_numbers<[1], [0], [0], [1], [0, 0, 1, 1], [], []>} : vector<8x128xbf16>, vector<128x512xbf16>, vector<8x512xf32> -> vector<8x512xf32>
    %228 = arith.addf %225, %227 : vector<8x512xf32>
    %229 = vector.extract_strided_slice %228 {offsets = [0, 0], sizes = [8, 128], strides = [1, 1]} : vector<8x512xf32> to vector<8x128xf32>
    %cst_95 = arith.constant 5.000000e-01 : f32
    %230 = vector.broadcast %cst_95 : f32 to vector<8x128xf32>
    %231 = arith.mulf %230, %229 : vector<8x128xf32>
    %232 = math.tanh %231 : vector<8x128xf32>
    %cst_96 = arith.constant 1.000000e+00 : f32
    %233 = vector.broadcast %cst_96 : f32 to vector<8x128xf32>
    %234 = arith.addf %232, %233 : vector<8x128xf32>
    %cst_97 = arith.constant 5.000000e-01 : f32
    %235 = vector.broadcast %cst_97 : f32 to vector<8x128xf32>
    %236 = arith.mulf %235, %234 : vector<8x128xf32>
    %237 = vector.extract_strided_slice %228 {offsets = [0, 128], sizes = [8, 128], strides = [1, 1]} : vector<8x512xf32> to vector<8x128xf32>
    %cst_98 = arith.constant 5.000000e-01 : f32
    %238 = vector.broadcast %cst_98 : f32 to vector<8x128xf32>
    %239 = arith.mulf %238, %237 : vector<8x128xf32>
    %240 = math.tanh %239 : vector<8x128xf32>
    %cst_99 = arith.constant 1.000000e+00 : f32
    %241 = vector.broadcast %cst_99 : f32 to vector<8x128xf32>
    %242 = arith.addf %240, %241 : vector<8x128xf32>
    %cst_100 = arith.constant 5.000000e-01 : f32
    %243 = vector.broadcast %cst_100 : f32 to vector<8x128xf32>
    %244 = arith.mulf %243, %242 : vector<8x128xf32>
    %245 = vector.extract_strided_slice %228 {offsets = [0, 256], sizes = [8, 128], strides = [1, 1]} : vector<8x512xf32> to vector<8x128xf32>
    %246 = math.tanh %245 : vector<8x128xf32>
    %247 = vector.extract_strided_slice %228 {offsets = [0, 384], sizes = [8, 128], strides = [1, 1]} : vector<8x512xf32> to vector<8x128xf32>
    %cst_101 = arith.constant 5.000000e-01 : f32
    %248 = vector.broadcast %cst_101 : f32 to vector<8x128xf32>
    %249 = arith.mulf %248, %247 : vector<8x128xf32>
    %250 = math.tanh %249 : vector<8x128xf32>
    %cst_102 = arith.constant 1.000000e+00 : f32
    %251 = vector.broadcast %cst_102 : f32 to vector<8x128xf32>
    %252 = arith.addf %250, %251 : vector<8x128xf32>
    %cst_103 = arith.constant 5.000000e-01 : f32
    %253 = vector.broadcast %cst_103 : f32 to vector<8x128xf32>
    %254 = arith.mulf %253, %252 : vector<8x128xf32>
    %255 = arith.mulf %244, %215 : vector<8x128xf32>
    %256 = arith.mulf %236, %246 : vector<8x128xf32>
    %257 = arith.addf %255, %256 : vector<8x128xf32>
    %258 = math.tanh %257 : vector<8x128xf32>
    %259 = arith.mulf %254, %258 : vector<8x128xf32>
    %260 = arith.truncf %259 : vector<8x128xf32> to vector<8x128xbf16>
    %261 = arith.index_cast %c5_i32 : i32 to index
    %c0_104 = arith.constant 0 : index
    %c0_105 = arith.constant 0 : index
    %262 = vector.load %arg8[%261, %c0_104, %c0_105] : memref<8x8x128xbf16, #tpu.memory_space<vmem>>, vector<1x8x128xbf16>
    %263 = vector.shape_cast %262 : vector<1x8x128xbf16> to vector<8x128xbf16>
    %264 = vector.shape_cast %260 : vector<8x128xbf16> to vector<1x8x128xbf16>
    tpu.vector_store %arg8[%261, %c0_104, %c0_105], %264 {strides = array<i32>} : memref<8x8x128xbf16, #tpu.memory_space<vmem>>, vector<1x8x128xbf16>,
    %c6_i32 = arith.constant 6 : i32
    %265 = arith.index_cast %c6_i32 : i32 to index
    %c0_106 = arith.constant 0 : index
    %c0_107 = arith.constant 0 : index
    %266 = vector.load %arg7[%265, %c0_106, %c0_107] : memref<8x8x512xf32, #tpu.memory_space<vmem>>, vector<1x8x512xf32>
    %267 = vector.shape_cast %266 : vector<1x8x512xf32> to vector<8x512xf32>
    %c0_108 = arith.constant 0 : index
    %c0_109 = arith.constant 0 : index
    %268 = vector.load %arg2[%c0_108, %c0_109] : memref<128x512xbf16, #tpu.memory_space<vmem>>, vector<128x512xbf16>
    %cst_110 = arith.constant dense<0.000000e+00> : vector<8x512xf32>
    %269 = tpu.matmul %260, %268, %cst_110 {dimension_numbers = #tpu.dot_dimension_numbers<[1], [0], [0], [1], [0, 0, 1, 1], [], []>} : vector<8x128xbf16>, vector<128x512xbf16>, vector<8x512xf32> -> vector<8x512xf32>
    %270 = arith.addf %267, %269 : vector<8x512xf32>
    %271 = vector.extract_strided_slice %270 {offsets = [0, 0], sizes = [8, 128], strides = [1, 1]} : vector<8x512xf32> to vector<8x128xf32>
    %cst_111 = arith.constant 5.000000e-01 : f32
    %272 = vector.broadcast %cst_111 : f32 to vector<8x128xf32>
    %273 = arith.mulf %272, %271 : vector<8x128xf32>
    %274 = math.tanh %273 : vector<8x128xf32>
    %cst_112 = arith.constant 1.000000e+00 : f32
    %275 = vector.broadcast %cst_112 : f32 to vector<8x128xf32>
    %276 = arith.addf %274, %275 : vector<8x128xf32>
    %cst_113 = arith.constant 5.000000e-01 : f32
    %277 = vector.broadcast %cst_113 : f32 to vector<8x128xf32>
    %278 = arith.mulf %277, %276 : vector<8x128xf32>
    %279 = vector.extract_strided_slice %270 {offsets = [0, 128], sizes = [8, 128], strides = [1, 1]} : vector<8x512xf32> to vector<8x128xf32>
    %cst_114 = arith.constant 5.000000e-01 : f32
    %280 = vector.broadcast %cst_114 : f32 to vector<8x128xf32>
    %281 = arith.mulf %280, %279 : vector<8x128xf32>
    %282 = math.tanh %281 : vector<8x128xf32>
    %cst_115 = arith.constant 1.000000e+00 : f32
    %283 = vector.broadcast %cst_115 : f32 to vector<8x128xf32>
    %284 = arith.addf %282, %283 : vector<8x128xf32>
    %cst_116 = arith.constant 5.000000e-01 : f32
    %285 = vector.broadcast %cst_116 : f32 to vector<8x128xf32>
    %286 = arith.mulf %285, %284 : vector<8x128xf32>
    %287 = vector.extract_strided_slice %270 {offsets = [0, 256], sizes = [8, 128], strides = [1, 1]} : vector<8x512xf32> to vector<8x128xf32>
    %288 = math.tanh %287 : vector<8x128xf32>
    %289 = vector.extract_strided_slice %270 {offsets = [0, 384], sizes = [8, 128], strides = [1, 1]} : vector<8x512xf32> to vector<8x128xf32>
    %cst_117 = arith.constant 5.000000e-01 : f32
    %290 = vector.broadcast %cst_117 : f32 to vector<8x128xf32>
    %291 = arith.mulf %290, %289 : vector<8x128xf32>
    %292 = math.tanh %291 : vector<8x128xf32>
    %cst_118 = arith.constant 1.000000e+00 : f32
    %293 = vector.broadcast %cst_118 : f32 to vector<8x128xf32>
    %294 = arith.addf %292, %293 : vector<8x128xf32>
    %cst_119 = arith.constant 5.000000e-01 : f32
    %295 = vector.broadcast %cst_119 : f32 to vector<8x128xf32>
    %296 = arith.mulf %295, %294 : vector<8x128xf32>
    %297 = arith.mulf %286, %257 : vector<8x128xf32>
    %298 = arith.mulf %278, %288 : vector<8x128xf32>
    %299 = arith.addf %297, %298 : vector<8x128xf32>
    %300 = math.tanh %299 : vector<8x128xf32>
    %301 = arith.mulf %296, %300 : vector<8x128xf32>
    %302 = arith.truncf %301 : vector<8x128xf32> to vector<8x128xbf16>
    %303 = arith.index_cast %c6_i32 : i32 to index
    %c0_120 = arith.constant 0 : index
    %c0_121 = arith.constant 0 : index
    %304 = vector.load %arg8[%303, %c0_120, %c0_121] : memref<8x8x128xbf16, #tpu.memory_space<vmem>>, vector<1x8x128xbf16>
    %305 = vector.shape_cast %304 : vector<1x8x128xbf16> to vector<8x128xbf16>
    %306 = vector.shape_cast %302 : vector<8x128xbf16> to vector<1x8x128xbf16>
    tpu.vector_store %arg8[%303, %c0_120, %c0_121], %306 {strides = array<i32>} : memref<8x8x128xbf16, #tpu.memory_space<vmem>>, vector<1x8x128xbf16>,
    %c7_i32 = arith.constant 7 : i32
    %307 = arith.index_cast %c7_i32 : i32 to index
    %c0_122 = arith.constant 0 : index
    %c0_123 = arith.constant 0 : index
    %308 = vector.load %arg7[%307, %c0_122, %c0_123] : memref<8x8x512xf32, #tpu.memory_space<vmem>>, vector<1x8x512xf32>
    %309 = vector.shape_cast %308 : vector<1x8x512xf32> to vector<8x512xf32>
    %c0_124 = arith.constant 0 : index
    %c0_125 = arith.constant 0 : index
    %310 = vector.load %arg2[%c0_124, %c0_125] : memref<128x512xbf16, #tpu.memory_space<vmem>>, vector<128x512xbf16>
    %cst_126 = arith.constant dense<0.000000e+00> : vector<8x512xf32>
    %311 = tpu.matmul %302, %310, %cst_126 {dimension_numbers = #tpu.dot_dimension_numbers<[1], [0], [0], [1], [0, 0, 1, 1], [], []>} : vector<8x128xbf16>, vector<128x512xbf16>, vector<8x512xf32> -> vector<8x512xf32>
    %312 = arith.addf %309, %311 : vector<8x512xf32>
    %313 = vector.extract_strided_slice %312 {offsets = [0, 0], sizes = [8, 128], strides = [1, 1]} : vector<8x512xf32> to vector<8x128xf32>
    %cst_127 = arith.constant 5.000000e-01 : f32
    %314 = vector.broadcast %cst_127 : f32 to vector<8x128xf32>
    %315 = arith.mulf %314, %313 : vector<8x128xf32>
    %316 = math.tanh %315 : vector<8x128xf32>
    %cst_128 = arith.constant 1.000000e+00 : f32
    %317 = vector.broadcast %cst_128 : f32 to vector<8x128xf32>
    %318 = arith.addf %316, %317 : vector<8x128xf32>
    %cst_129 = arith.constant 5.000000e-01 : f32
    %319 = vector.broadcast %cst_129 : f32 to vector<8x128xf32>
    %320 = arith.mulf %319, %318 : vector<8x128xf32>
    %321 = vector.extract_strided_slice %312 {offsets = [0, 128], sizes = [8, 128], strides = [1, 1]} : vector<8x512xf32> to vector<8x128xf32>
    %cst_130 = arith.constant 5.000000e-01 : f32
    %322 = vector.broadcast %cst_130 : f32 to vector<8x128xf32>
    %323 = arith.mulf %322, %321 : vector<8x128xf32>
    %324 = math.tanh %323 : vector<8x128xf32>
    %cst_131 = arith.constant 1.000000e+00 : f32
    %325 = vector.broadcast %cst_131 : f32 to vector<8x128xf32>
    %326 = arith.addf %324, %325 : vector<8x128xf32>
    %cst_132 = arith.constant 5.000000e-01 : f32
    %327 = vector.broadcast %cst_132 : f32 to vector<8x128xf32>
    %328 = arith.mulf %327, %326 : vector<8x128xf32>
    %329 = vector.extract_strided_slice %312 {offsets = [0, 256], sizes = [8, 128], strides = [1, 1]} : vector<8x512xf32> to vector<8x128xf32>
    %330 = math.tanh %329 : vector<8x128xf32>
    %331 = vector.extract_strided_slice %312 {offsets = [0, 384], sizes = [8, 128], strides = [1, 1]} : vector<8x512xf32> to vector<8x128xf32>
    %cst_133 = arith.constant 5.000000e-01 : f32
    %332 = vector.broadcast %cst_133 : f32 to vector<8x128xf32>
    %333 = arith.mulf %332, %331 : vector<8x128xf32>
    %334 = math.tanh %333 : vector<8x128xf32>
    %cst_134 = arith.constant 1.000000e+00 : f32
    %335 = vector.broadcast %cst_134 : f32 to vector<8x128xf32>
    %336 = arith.addf %334, %335 : vector<8x128xf32>
    %cst_135 = arith.constant 5.000000e-01 : f32
    %337 = vector.broadcast %cst_135 : f32 to vector<8x128xf32>
    %338 = arith.mulf %337, %336 : vector<8x128xf32>
    %339 = arith.mulf %328, %299 : vector<8x128xf32>
    %340 = arith.mulf %320, %330 : vector<8x128xf32>
    %341 = arith.addf %339, %340 : vector<8x128xf32>
    %342 = math.tanh %341 : vector<8x128xf32>
    %343 = arith.mulf %338, %342 : vector<8x128xf32>
    %344 = arith.truncf %343 : vector<8x128xf32> to vector<8x128xbf16>
    %345 = arith.index_cast %c7_i32 : i32 to index
    %c0_136 = arith.constant 0 : index
    %c0_137 = arith.constant 0 : index
    %346 = vector.load %arg8[%345, %c0_136, %c0_137] : memref<8x8x128xbf16, #tpu.memory_space<vmem>>, vector<1x8x128xbf16>
    %347 = vector.shape_cast %346 : vector<1x8x128xbf16> to vector<8x128xbf16>
    %348 = vector.shape_cast %344 : vector<8x128xbf16> to vector<1x8x128xbf16>
    tpu.vector_store %arg8[%345, %c0_136, %c0_137], %348 {strides = array<i32>} : memref<8x8x128xbf16, #tpu.memory_space<vmem>>, vector<1x8x128xbf16>,
    %c8_i32 = arith.constant 8 : i32
    %c0_138 = arith.constant 0 : index
    %c0_139 = arith.constant 0 : index
    %c0_140 = arith.constant 0 : index
    %349 = vector.load %arg8[%c0_138, %c0_139, %c0_140] : memref<8x8x128xbf16, #tpu.memory_space<vmem>>, vector<8x8x128xbf16>
    %350 = vector.shape_cast %349 : vector<8x8x128xbf16> to vector<64x128xbf16>
    %c0_141 = arith.constant 0 : index
    %c0_142 = arith.constant 0 : index
    %351 = vector.load %arg4[%c0_141, %c0_142] : memref<128x128xbf16, #tpu.memory_space<vmem>>, vector<128x128xbf16>
    %cst_143 = arith.constant dense<0.000000e+00> : vector<64x128xf32>
    %352 = tpu.matmul %350, %351, %cst_143 {dimension_numbers = #tpu.dot_dimension_numbers<[1], [0], [0], [1], [0, 0, 1, 1], [], []>} : vector<64x128xbf16>, vector<128x128xbf16>, vector<64x128xf32> -> vector<64x128xf32>
    %c0_144 = arith.constant 0 : index
    %c0_145 = arith.constant 0 : index
    %353 = vector.load %arg5[%c0_144, %c0_145] : memref<1x128xf32, #tpu.memory_space<vmem>>, vector<1x128xf32>
    %354 = vector.broadcast %353 : vector<1x128xf32> to vector<64x128xf32>
    %355 = arith.addf %352, %354 : vector<64x128xf32>
    %356 = vector.shape_cast %355 : vector<64x128xf32> to vector<8x8x128xf32>
    %c0_146 = arith.constant 0 : index
    %c0_147 = arith.constant 0 : index
    %c0_148 = arith.constant 0 : index
    %357 = vector.load %arg6[%c0_146, %c0_147, %c0_148] : memref<8x8x128xf32, #tpu.memory_space<vmem>>, vector<8x8x128xf32>
    tpu.vector_store %arg6[%c0_146, %c0_147, %c0_148], %356 {strides = array<i32>} : memref<8x8x128xf32, #tpu.memory_space<vmem>>, vector<8x8x128xf32>,
    return
  }
}

</mosaic_0001>

<bundles_post_ra>
// kernel: lstm_memory_forward.1
= control target key start
LH: loop header
LB: loop body
LE: loop exit
PB: predicated region body
PF: predicated region fallthrough
CT: control target
= control target key end

     0   :  { %11 = vsyncpa [#allocation5], 0  ;;  %s3363_s21 = smov [#allocation4]   ;;  %s4005_s0 = inlined_call_operand.vmem [shape: f32[8,8,1], index: 0, kind: input, shape index: {}]   ;;  %s4006_s1 = inlined_call_operand.vmem [shape: f32[1,512], index: 1, kind: input, shape index: {}]   ;;  %s4007_s2 = inlined_call_operand.hbm [shape: bf16[128,512], index: 2, kind: input, shape index: {}]   ;;  %s4008_s3 = inlined_call_operand.vmem [shape: f32[1,512], index: 3, kind: input, shape index: {}]   ;;  %s4009_s4 = inlined_call_operand.vmem [shape: bf16[128,128], index: 4, kind: input, shape index: {}]   ;;  %s4010_s5 = inlined_call_operand.vmem [shape: f32[1,128], index: 5, kind: input, shape index: {}]   ;;  %s4011_s6 = inlined_call_operand.vmem [shape: f32[8,8,128], index: 6, kind: output, shape index: {}]  }
   0x1   :  { %s21_s22 = sshll.u32 %s3363_s21, 4  ;;  %s3339_s25 = scalar_lea.hbm %s4007_s2, 4096  ;;  %s22_s22 = int_to_ptr.vmem [resolvable:$true] %s21_s22 }
   0x2   :  { %p3340_p0 = scmp.ne.s32.totalorder %s4007_s2, %s3339_s25  ;;  %p3343_p1 = scmp.lt.u32.totalorder %s3339_s25, %s4007_s2 }
   0x4   :  { %p3345_p2 = pnand %p3343_p1, %p3340_p0 }
   0x6   :  { %3348 = shalt.err (!%p3345_p2)
}
   0x7   :  { %s3349_s30 = scalar_lea.vmem %s22_s22, 4096  ;;  %p3354_p4 = scmp.lt.s32.totalorder %s22_s22, %s22_s22 }
   0x8   :  { %p3350_p3 = scmp.ne.s32.totalorder %s22_s22, %s3349_s30  ;;  %p3355_p5 = scmp.lt.s32.totalorder %s3349_s30, %s3349_s30 }
   0xa   :  { %p3356_p6 = por %p3355_p5, %p3354_p4 }
   0xc   :  { %p3357_p7 = pnand %p3356_p6, %p3350_p3 }
   0xe   :  { %3360 = shalt.err (!%p3357_p7)
}
   0xf   :  { %s3364_s7 = smov 256   ;;  %s3365_s8 = smov 16  }
  0x10   :  { %27 = dma.hbm_to_vmem [thread:$0]  %s4007_s2, 4096, %s22_s22, [#allocation5], %s3364_s7, %s3364_s7, %s3365_s8  }
  0x11   :  { %3361 = dma.done.wait [#allocation5], 4096  }
  0x12   :  { %3362 = vsyncadd [#allocation5], 4294963200  ;;  %v3366_v0 = vmov 0   ;;  %v3418_v1 = vld [vmem:[#allocation4 + $0x4] ss:$16 sps:$4 sm:$0xff]   ;;  %v39_v17 = vld [vmem:[%s4005_s0 + $0x8] sm:$0xff]  ;;  %v88_v37 = vlaneseq }
  0x13   :  { %454 = vmatprep.mubr.bf16.mxu1 %v3366_v0  ;;  %3146 = vset.pattern.permute.xlu0 %v3366_v0  ;;  %v3420_v2 = vld [vmem:[#allocation4] ss:$16 sps:$4 sm:$0xff]   ;;  %v3423_v3 = vld [vmem:[#allocation4 + $0x24] ss:$16 sps:$4 sm:$0xff]   ;;  %v3485_v20 = vld [vmem:[#allocation4 + $0xc] ss:$16 sps:$4 sm:$0xff]  }
  0x14   :  { %757 = vmatprep.mubr.bf16.mxu0 %v3366_v0  ;;  %3147 = vset.pattern.permute.xlu1 %v3366_v0  ;;  %v3427_v4 = vld [vmem:[#allocation4 + $0x20] ss:$16 sps:$4 sm:$0xff]   ;;  %v3431_v5 = vld [vmem:[#allocation4 + $0x44] ss:$16 sps:$4 sm:$0xff]   ;;  %v3491_v21 = vld [vmem:[#allocation4 + $0x8] ss:$16 sps:$4 sm:$0xff]  }
  0x15   :  { %422 = vmatprep.subr.bf16.mxu1 %v3418_v1  ;;  %725 = vmatprep.subr.bf16.mxu0 %v3418_v1  ;;  %v3435_v6 = vld [vmem:[#allocation4 + $0x40] ss:$16 sps:$4 sm:$0xff]   ;;  %v3439_v7 = vld [vmem:[#allocation4 + $0x64] ss:$16 sps:$4 sm:$0xff]   ;;  %v3496_v23 = vld [vmem:[#allocation4 + $0x2c] ss:$16 sps:$4 sm:$0xff]  }
  0x16   :  { %423 = vmatpush1.bf16.msra.mxu1 %v3420_v2  ;;  %726 = vmatpush1.bf16.msra.mxu0 %v3420_v2  ;;  %v3443_v8 = vld [vmem:[#allocation4 + $0x60] ss:$16 sps:$4 sm:$0xff]   ;;  %v3447_v9 = vld [vmem:[#allocation4 + $0x84] ss:$16 sps:$4 sm:$0xff]   ;;  %v3502_v24 = vld [vmem:[#allocation4 + $0x28] ss:$16 sps:$4 sm:$0xff]  }
  0x17   :  { %424 = vmatprep.subr.bf16.mxu1 %v3423_v3  ;;  %727 = vmatprep.subr.bf16.mxu0 %v3423_v3  ;;  %v3451_v10 = vld [vmem:[#allocation4 + $0x80] ss:$16 sps:$4 sm:$0xff]   ;;  %v3455_v11 = vld [vmem:[#allocation4 + $0xa4] ss:$16 sps:$4 sm:$0xff]   ;;  %v3505_v25 = vld [vmem:[#allocation4 + $0x4c] ss:$16 sps:$4 sm:$0xff]  }
  0x18   :  { %v3459_v12 = vld [vmem:[#allocation4 + $0xa0] ss:$16 sps:$4 sm:$0xff]   ;;  %v3463_v13 = vld [vmem:[#allocation4 + $0xc4] ss:$16 sps:$4 sm:$0xff]   ;;  %v3510_v26 = vld [vmem:[#allocation4 + $0x48] ss:$16 sps:$4 sm:$0xff]  }
  0x19   :  { %v38_v14 = vld [vmem:[%s4005_s0] sm:$0xff]  ;;  %v44_v22 = vld [vmem:[%s4005_s0 + $0x30] sm:$0xff]  ;;  %v3514_v27 = vld [vmem:[#allocation4 + $0x6c] ss:$16 sps:$4 sm:$0xff]   ;;  %v89_v38 = vshrl.u32 %v88_v37, 7 }
  0x1a   :  { %425 = vmatpush1.bf16.msra.mxu1 %v3427_v4  ;;  %728 = vmatpush1.bf16.msra.mxu0 %v3427_v4  ;;  %v3469_v15 = vld [vmem:[#allocation4 + $0xc0] ss:$16 sps:$4 sm:$0xff]   ;;  %v3471_v16 = vld [vmem:[#allocation4 + $0xe4] ss:$16 sps:$4 sm:$0xff]   ;;  %v3517_v28 = vld [vmem:[#allocation4 + $0x68] ss:$16 sps:$4 sm:$0xff]  }
  0x1b   :  { %426 = vmatprep.subr.bf16.mxu1 %v3431_v5  ;;  %729 = vmatprep.subr.bf16.mxu0 %v3431_v5  ;;  %v3480_v18 = vld [vmem:[#allocation4 + $0xe0] ss:$16 sps:$4 sm:$0xff]   ;;  %v3520_v29 = vld [vmem:[#allocation4 + $0x8c] ss:$16 sps:$4 sm:$0xff]   ;;  %v3523_v30 = vld [vmem:[#allocation4 + $0x88] ss:$16 sps:$4 sm:$0xff]  }
  0x1c   :  { %49 = vperm.xlu0 %3146, %v38_v14   ;;  %v42_v19 = vld [vmem:[%s4005_s0 + $0x20] sm:$0xff]  ;;  %v3526_v31 = vld [vmem:[#allocation4 + $0xac] ss:$16 sps:$4 sm:$0xff]   ;;  %v3529_v32 = vld [vmem:[#allocation4 + $0xa8] ss:$16 sps:$4 sm:$0xff]   ;;  %v94_v40 = vsub.s32 1, %v89_v38 }
  0x1d   :  { %v3532_v33 = vld [vmem:[#allocation4 + $0xcc] ss:$16 sps:$4 sm:$0xff]   ;;  %v3535_v34 = vld [vmem:[#allocation4 + $0xc8] ss:$16 sps:$4 sm:$0xff]   ;;  %v46_v42 = vld [vmem:[%s4006_s1] sm:$0xf] }
  0x1e   :  { %427 = vmatpush1.bf16.msra.mxu1 %v3435_v6  ;;  %730 = vmatpush1.bf16.msra.mxu0 %v3435_v6  ;;  %v3538_v35 = vld [vmem:[#allocation4 + $0xec] ss:$16 sps:$4 sm:$0xff]   ;;  %v3541_v36 = vld [vmem:[#allocation4 + $0xe8] ss:$16 sps:$4 sm:$0xff]   ;;  %v90_v44 = vsub.s32 0, %v89_v38  ;;  %v3567_v46 = vrot.slane %v46_v42, %v94_v40  ;;  %v98_v58 = vsub.s32 2, %v89_v38 }
  0x1f   :  { %428 = vmatprep.subr.bf16.mxu1 %v3439_v7  ;;  %731 = vmatprep.subr.bf16.mxu0 %v3439_v7  ;;  %v140_v48 = vld [vmem:[%s4008_s3] sm:$0xf]  ;;  %v102_v59 = vsub.s32 3, %v89_v38 }
  0x20   :  { %54 = vperm.xlu0 %3146, %v39_v17   ;;  %v3572_v49 = vrot.slane %v46_v42, %v90_v44  ;;  %v3575_v51 = vrot.slane %v140_v48, %v94_v40  ;;  %v3578_v53 = vrot.slane %v140_v48, %v90_v44  ;;  %v3582_v62 = vrot.slane %v46_v42, %v98_v58 }
  0x21   :  { %v3584_v63 = vrot.slane %v46_v42, %v102_v59  ;;  %v3587_v17 = vrot.slane %v140_v48, %v98_v58 }
  0x22   :  { %429 = vmatpush1.bf16.msra.mxu1 %v3443_v8  ;;  %732 = vmatpush1.bf16.msra.mxu0 %v3443_v8 }
  0x23   :  { %430 = vmatprep.subr.bf16.mxu1 %v3447_v9  ;;  %733 = vmatprep.subr.bf16.mxu0 %v3447_v9 }
  0x24   :  { %69 = vperm.xlu0 %3146, %v42_v19  }
  0x26   :  { %431 = vmatpush1.bf16.msra.mxu1 %v3451_v10  ;;  %734 = vmatpush1.bf16.msra.mxu0 %v3451_v10 }
  0x27   :  { %432 = vmatprep.subr.bf16.mxu1 %v3455_v11  ;;  %735 = vmatprep.subr.bf16.mxu0 %v3455_v11 }
  0x28   :  { %79 = vperm.xlu0 %3146, %v44_v22   ;;  %v3590_v22 = vrot.slane %v140_v48, %v102_v59 }
  0x2a   :  { %433 = vmatpush1.bf16.msra.mxu1 %v3459_v12  ;;  %736 = vmatpush1.bf16.msra.mxu0 %v3459_v12 }
  0x2b   :  { %434 = vmatprep.subr.bf16.mxu1 %v3463_v13  ;;  %737 = vmatprep.subr.bf16.mxu0 %v3463_v13 }
  0x2e   :  { %435 = vmatpush1.bf16.msra.mxu1 %v3469_v15  ;;  %738 = vmatpush1.bf16.msra.mxu0 %v3469_v15 }
  0x2f   :  { %436 = vmatprep.subr.bf16.mxu1 %v3471_v16  ;;  %739 = vmatprep.subr.bf16.mxu0 %v3471_v16 }
  0x32   :  { %437 = vmatpush1.bf16.msra.mxu1 %v3480_v18  ;;  %740 = vmatpush1.bf16.msra.mxu0 %v3480_v18 }
  0x33   :  { %463 = vmatprep.subr.bf16.mxu1 %v3485_v20  ;;  %1029 = vmatprep.subr.bf16.mxu0 %v3418_v1 }
  0x35   :  { %455 = vmatmul.mubr.bf16.vlgmr.msra.gmra.mrb[0].mxu1 %v3366_v0 }
  0x36   :  { %464 = vmatpush1.bf16.msra.mxu1 %v3491_v21  ;;  %495 = vmatprep.mubr.bf16.mxu1 %v3366_v0 }
  0x37   :  { %465 = vmatprep.subr.bf16.mxu1 %v3496_v23 }
  0x3a   :  { %466 = vmatpush1.bf16.msra.mxu1 %v3502_v24 }
  0x3b   :  { %467 = vmatprep.subr.bf16.mxu1 %v3505_v25 }
  0x3e   :  { %468 = vmatpush1.bf16.msra.mxu1 %v3510_v26 }
  0x3f   :  { %469 = vmatprep.subr.bf16.mxu1 %v3514_v27 }
  0x42   :  { %470 = vmatpush1.bf16.msra.mxu1 %v3517_v28 }
  0x43   :  { %471 = vmatprep.subr.bf16.mxu1 %v3520_v29 }
  0x46   :  { %472 = vmatpush1.bf16.msra.mxu1 %v3523_v30 }
  0x47   :  { %473 = vmatprep.subr.bf16.mxu1 %v3526_v31 }
  0x4a   :  { %474 = vmatpush1.bf16.msra.mxu1 %v3529_v32 }
  0x4b   :  { %475 = vmatprep.subr.bf16.mxu1 %v3532_v33 }
  0x4e   :  { %476 = vmatpush1.bf16.msra.mxu1 %v3535_v34 }
  0x4f   :  { %477 = vmatprep.subr.bf16.mxu1 %v3538_v35 }
  0x52   :  { %478 = vmatpush1.bf16.msra.mxu1 %v3541_v36 }
  0x53   :  { %766 = vmatprep.subr.bf16.mxu1 %v3485_v20 }
  0x55   :  { %496 = vmatmul.mubr.bf16.vlgmr.msra.gmra.mrb[4].mxu1 %v3366_v0 }
  0x56   :  { %767 = vmatpush1.bf16.msra.mxu1 %v3491_v21  ;;  %798 = vmatprep.mubr.bf16.mxu1 %v3366_v0 }
  0x57   :  { %768 = vmatprep.subr.bf16.mxu1 %v3496_v23 }
  0x5a   :  { %769 = vmatpush1.bf16.msra.mxu1 %v3502_v24 }
  0x5b   :  { %770 = vmatprep.subr.bf16.mxu1 %v3505_v25 }
  0x5e   :  { %771 = vmatpush1.bf16.msra.mxu1 %v3510_v26 }
  0x5f   :  { %772 = vmatprep.subr.bf16.mxu1 %v3514_v27 }
  0x62   :  { %773 = vmatpush1.bf16.msra.mxu1 %v3517_v28 }
  0x63   :  { %774 = vmatprep.subr.bf16.mxu1 %v3520_v29 }
  0x66   :  { %775 = vmatpush1.bf16.msra.mxu1 %v3523_v30 }
  0x67   :  { %776 = vmatprep.subr.bf16.mxu1 %v3526_v31 }
  0x6a   :  { %777 = vmatpush1.bf16.msra.mxu1 %v3529_v32 }
  0x6b   :  { %778 = vmatprep.subr.bf16.mxu1 %v3532_v33 }
  0x6e   :  { %779 = vmatpush1.bf16.msra.mxu1 %v3535_v34 }
  0x6f   :  { %780 = vmatprep.subr.bf16.mxu1 %v3538_v35 }
  0x72   :  { %781 = vmatpush1.bf16.msra.mxu1 %v3541_v36 }
  0x73   :  { %1070 = vmatprep.subr.bf16.mxu1 %v3485_v20 }
  0x9b   :  { %v50_v47 = vpop.permute.xlu0 %49 }
  0x9c   :  { %v109_v50 = vmul.f32 %v3567_v46, %v50_v47  ;;  %v108_v52 = vmul.f32 %v3572_v49, %v50_v47  ;;  %v110_v14 = vmul.f32 %v3582_v62, %v50_v47  ;;  %v111_v19 = vmul.f32 %v3584_v63, %v50_v47 }
  0x9e   :  { %v163_v54 = vadd.f32 %v3575_v51, %v109_v50  ;;  %v162_v55 = vadd.f32 %v3578_v53, %v108_v52  ;;  %v164_v37 = vadd.f32 %v3587_v17, %v110_v14  ;;  %v165_v38 = vadd.f32 %v3590_v22, %v111_v19 }
 0x108   :  { %v456_v39 = vpop.f32.mrb[0].mxu1 }
 0x109   :  { %v458_v41 = vpop.f32.mrb[1].mxu1  ;;  %v504_v57 = vadd.f32 %v456_v39, %v162_v55 }
 0x10a   :  { %v460_v43 = vpop.f32.mrb[2].mxu1  ;;  %v505_v56 = vadd.f32 %v458_v41, %v163_v54 }
 0x10b   :  { %v461_v45 = vpop.f32.mrb[3].mxu1  ;;  %v508_v61 = vmul.f32 0.5, %v504_v57 }
 0x10c   :  { %v512_v60 = vmul.f32 0.5, %v505_v56 }
 0x10e   :  { %3259 = vtanh.f32 %v512_v60 }
 0x10f   :  { %3261 = vtanh.f32 %v508_v61 }
 0x118   :  { %v3260_v44 = vpop.eup %3259 }
 0x119   :  { %v3262_v50 = vpop.eup %3261  ;;  %v514_v52 = vadd.f32 1.0, %v3260_v44 }
 0x11a   :  { %v510_v55 = vadd.f32 1.0, %v3262_v50 }
 0x11b   :  { %v515_v56 = vmul.f32 0.5, %v514_v52 }
 0x11c   :  { %v511_v47 = vmul.f32 0.5, %v510_v55 }
 0x11d   :  { %v521_v57 = vmul.f32 0.0, %v515_v56 }
 0x128   :  { %v497_v39 = vpop.f32.mrb[4].mxu1 }
 0x129   :  { %v506_v40 = vadd.f32 %v497_v39, %v164_v37  ;;  %v499_v41 = vpop.f32.mrb[5].mxu1 }
 0x12a   :  { %v507_v43 = vadd.f32 %v499_v41, %v165_v38  ;;  %v501_v42 = vpop.f32.mrb[6].mxu1  ;;  %v40_v38 = vld [vmem:[%s4005_s0 + $0x10] sm:$0xff] }
 0x12b   :  { %3263 = vtanh.f32 %v506_v40  ;;  %v502_v45 = vpop.f32.mrb[7].mxu1  ;;  %59 = vperm.xlu1 %3147, %v40_v38   ;;  %v41_v40 = vld [vmem:[%s4005_s0 + $0x18] sm:$0xff] }
 0x12c   :  { %v517_v54 = vmul.f32 0.5, %v507_v43 }
 0x12e   :  { %3265 = vtanh.f32 %v517_v54 }
 0x12f   :  { %64 = vperm.xlu1 %3147, %v41_v40  }
 0x135   :  { %v3264_v48 = vpop.eup %3263 }
 0x136   :  { %v522_v58 = vmul.f32 %v3264_v48, %v511_v47 }
 0x138   :  { %v3594_v59 = vadd.f32 %v522_v58, %v521_v57  ;;  %v3266_v60 = vpop.eup %3265 }
 0x139   :  { %v519_v61 = vadd.f32 1.0, %v3266_v60 }
 0x13a   :  { %3267 = vtanh.f32 %v3594_v59 }
 0x13b   :  { %v520_v14 = vmul.f32 0.5, %v519_v61 }
 0x144   :  { %v3268_v19 = vpop.eup %3267 }
 0x145   :  { %v525_v37 = vmul.f32 %v3268_v19, %v520_v14 }
 0x147   :  { %v526_v39 = vpack.c.bf16 %v525_v37, %v525_v37 }
 0x149   :  { %527 = vst [vmem:[#allocation3] sm:$0xf] %v526_v39  ;;  %758 = vmatmul.mubr.bf16.vlgmr.msra.gmra.mrb[0].mxu0 %v526_v39  ;;  %799 = vmatmul.mubr.bf16.vlgmr.msra.gmra.mrb[8].mxu1 %v526_v39 }
 0x14a   :  { %1030 = vmatpush1.bf16.msra.mxu0 %v3420_v2  ;;  %1071 = vmatpush1.bf16.msra.mxu1 %v3491_v21 }
 0x14b   :  { %1031 = vmatprep.subr.bf16.mxu0 %v3423_v3  ;;  %1072 = vmatprep.subr.bf16.mxu1 %v3496_v23 }
 0x14c   :  { %1061 = vmatprep.mubr.bf16.mxu0 %v3366_v0  ;;  %1102 = vmatprep.mubr.bf16.mxu1 %v3366_v0 }
 0x14e   :  { %1032 = vmatpush1.bf16.msra.mxu0 %v3427_v4  ;;  %1073 = vmatpush1.bf16.msra.mxu1 %v3502_v24 }
 0x14f   :  { %1033 = vmatprep.subr.bf16.mxu0 %v3431_v5  ;;  %1074 = vmatprep.subr.bf16.mxu1 %v3505_v25 }
 0x152   :  { %1034 = vmatpush1.bf16.msra.mxu0 %v3435_v6  ;;  %1075 = vmatpush1.bf16.msra.mxu1 %v3510_v26 }
 0x153   :  { %1035 = vmatprep.subr.bf16.mxu0 %v3439_v7  ;;  %1076 = vmatprep.subr.bf16.mxu1 %v3514_v27 }
 0x156   :  { %1036 = vmatpush1.bf16.msra.mxu0 %v3443_v8  ;;  %1077 = vmatpush1.bf16.msra.mxu1 %v3517_v28 }
 0x157   :  { %1037 = vmatprep.subr.bf16.mxu0 %v3447_v9  ;;  %1078 = vmatprep.subr.bf16.mxu1 %v3520_v29 }
 0x15a   :  { %1038 = vmatpush1.bf16.msra.mxu0 %v3451_v10  ;;  %1079 = vmatpush1.bf16.msra.mxu1 %v3523_v30 }
 0x15b   :  { %1039 = vmatprep.subr.bf16.mxu0 %v3455_v11  ;;  %1080 = vmatprep.subr.bf16.mxu1 %v3526_v31 }
 0x15e   :  { %1040 = vmatpush1.bf16.msra.mxu0 %v3459_v12  ;;  %1081 = vmatpush1.bf16.msra.mxu1 %v3529_v32 }
 0x15f   :  { %1041 = vmatprep.subr.bf16.mxu0 %v3463_v13  ;;  %1082 = vmatprep.subr.bf16.mxu1 %v3532_v33 }
 0x162   :  { %1042 = vmatpush1.bf16.msra.mxu0 %v3469_v15  ;;  %1083 = vmatpush1.bf16.msra.mxu1 %v3535_v34 }
 0x163   :  { %1043 = vmatprep.subr.bf16.mxu0 %v3471_v16  ;;  %1084 = vmatprep.subr.bf16.mxu1 %v3538_v35  ;;  %v43_v16 = vld [vmem:[%s4005_s0 + $0x28] sm:$0xff] }
 0x164   :  { %74 = vperm.xlu1 %3147, %v43_v16  }
 0x166   :  { %1044 = vmatpush1.bf16.msra.mxu0 %v3480_v18  ;;  %1085 = vmatpush1.bf16.msra.mxu1 %v3541_v36  ;;  %v55_v18 = vpop.permute.xlu0 %54 }
 0x167   :  { %1333 = vmatprep.subr.bf16.mxu0 %v3418_v1  ;;  %1374 = vmatprep.subr.bf16.mxu1 %v3485_v20  ;;  %v45_v1 = vld [vmem:[%s4005_s0 + $0x38] sm:$0xff]  ;;  %v112_v20 = vmul.f32 %v3572_v49, %v55_v18  ;;  %v113_v41 = vmul.f32 %v3567_v46, %v55_v18  ;;  %v114_v42 = vmul.f32 %v3582_v62, %v55_v18 }
 0x168   :  { %84 = vperm.xlu1 %3147, %v45_v1   ;;  %v115_v60 = vmul.f32 %v3584_v63, %v55_v18 }
 0x169   :  { %v166_v43 = vadd.f32 %v3578_v53, %v112_v20  ;;  %v167_v50 = vadd.f32 %v3575_v51, %v113_v41  ;;  %v168_v58 = vadd.f32 %v3587_v17, %v114_v42 }
 0x16a   :  { %v169_v39 = vadd.f32 %v3590_v22, %v115_v60 }
 0x21c   :  { %v759_v44 = vpop.f32.mrb[0].mxu0  ;;  %v800_v45 = vpop.f32.mrb[8].mxu1 }
 0x21d   :  { %v807_v52 = vadd.f32 %v759_v44, %v166_v43  ;;  %v761_v54 = vpop.f32.mrb[1].mxu0  ;;  %v802_v55 = vpop.f32.mrb[9].mxu1  ;;  %v809_v37 = vadd.f32 %v800_v45, %v168_v58 }
 0x21e   :  { %v808_v56 = vadd.f32 %v761_v54, %v167_v50  ;;  %v763_v47 = vpop.f32.mrb[2].mxu0  ;;  %v804_v48 = vpop.f32.mrb[10].mxu1  ;;  %v810_v38 = vadd.f32 %v802_v55, %v169_v39 }
 0x21f   :  { %v811_v57 = vmul.f32 0.5, %v807_v52  ;;  %v764_v61 = vpop.f32.mrb[3].mxu0  ;;  %v805_v14 = vpop.f32.mrb[11].mxu1 }
 0x220   :  { %v815_v19 = vmul.f32 0.5, %v808_v56  ;;  %v820_v40 = vmul.f32 0.5, %v810_v38 }
 0x221   :  { %3269 = vtanh.f32 %v811_v57 }
 0x222   :  { %3271 = vtanh.f32 %v815_v19 }
 0x223   :  { %3273 = vtanh.f32 %v809_v37 }
 0x224   :  { %3275 = vtanh.f32 %v820_v40 }
 0x22b   :  { %v3270_v16 = vpop.eup %3269 }
 0x22c   :  { %v3272_v1 = vpop.eup %3271  ;;  %v813_v20 = vadd.f32 1.0, %v3270_v16 }
 0x22d   :  { %v817_v41 = vadd.f32 1.0, %v3272_v1  ;;  %v3274_v42 = vpop.eup %3273 }
 0x22e   :  { %v814_v43 = vmul.f32 0.5, %v813_v20  ;;  %v3276_v45 = vpop.eup %3275 }
 0x22f   :  { %v818_v44 = vmul.f32 0.5, %v817_v41  ;;  %v822_v54 = vadd.f32 1.0, %v3276_v45  ;;  %v3705_v41 = vld [vmem:[#allocation4 + $0x4] ss:$16 sps:$4 sm:$0xff]   ;;  %v3723_v45 = vld [vmem:[#allocation4 + $0x28] ss:$16 sps:$4 sm:$0xff]  }
 0x230   :  { %v825_v18 = vmul.f32 %v3274_v42, %v814_v43  ;;  %v3707_v43 = vld [vmem:[#allocation4 + $0xc] ss:$16 sps:$4 sm:$0xff]   ;;  %v3709_v42 = vld [vmem:[#allocation4] ss:$16 sps:$4 sm:$0xff]  }
 0x231   :  { %v824_v50 = vmul.f32 %v818_v44, %v3594_v59  ;;  %v823_v56 = vmul.f32 0.5, %v822_v54  ;;  %v3711_v44 = vld [vmem:[#allocation4 + $0x8] ss:$16 sps:$4 sm:$0xff]   ;;  %v3729_v54 = vld [vmem:[#allocation4 + $0x44] ss:$16 sps:$4 sm:$0xff]  }
 0x233   :  { %v3652_v52 = vadd.f32 %v825_v18, %v824_v50  ;;  %v3717_v18 = vld [vmem:[#allocation4 + $0x24] ss:$16 sps:$4 sm:$0xff]   ;;  %v3719_v50 = vld [vmem:[#allocation4 + $0x2c] ss:$16 sps:$4 sm:$0xff]  }
 0x235   :  { %3277 = vtanh.f32 %v3652_v52 }
 0x23f   :  { %v3278_v55 = vpop.eup %3277 }
 0x240   :  { %v828_v47 = vmul.f32 %v3278_v55, %v823_v56  ;;  %v3731_v56 = vld [vmem:[#allocation4 + $0x4c] ss:$16 sps:$4 sm:$0xff]   ;;  %v3733_v55 = vld [vmem:[#allocation4 + $0x40] ss:$16 sps:$4 sm:$0xff]  }
 0x242   :  { %v829_v48 = vpack.c.bf16 %v828_v47, %v828_v47  ;;  %v3735_v47 = vld [vmem:[#allocation4 + $0x48] ss:$16 sps:$4 sm:$0xff]  }
 0x244   :  { %831 = vst [vmem:[#allocation3 + $0x4] sm:$0xf] %v829_v48  ;;  %1062 = vmatmul.mubr.bf16.vlgmr.msra.gmra.mrb[4].mxu0 %v829_v48  ;;  %1103 = vmatmul.mubr.bf16.vlgmr.msra.gmra.mrb[12].mxu1 %v829_v48  ;;  %v3741_v48 = vld [vmem:[#allocation4 + $0x64] ss:$16 sps:$4 sm:$0xff]  }
 0x245   :  { %1334 = vmatpush1.bf16.msra.mxu0 %v3420_v2  ;;  %1375 = vmatpush1.bf16.msra.mxu1 %v3491_v21  ;;  %v3685_v2 = vld [vmem:[#allocation4 + $0xe4] ss:$16 sps:$4 sm:$0xff]  }
 0x246   :  { %1335 = vmatprep.subr.bf16.mxu0 %v3423_v3  ;;  %1376 = vmatprep.subr.bf16.mxu1 %v3496_v23  ;;  %v3687_v3 = vld [vmem:[#allocation4 + $0xe0] ss:$16 sps:$4 sm:$0xff]  }
 0x247   :  { %1365 = vmatprep.mubr.bf16.mxu0 %v3366_v0  ;;  %1406 = vmatprep.mubr.bf16.mxu1 %v3366_v0 }
 0x249   :  { %1336 = vmatpush1.bf16.msra.mxu0 %v3427_v4  ;;  %1377 = vmatpush1.bf16.msra.mxu1 %v3502_v24  ;;  %v60_v4 = vpop.permute.xlu1 %59 }
 0x24a   :  { %1337 = vmatprep.subr.bf16.mxu0 %v3431_v5  ;;  %1378 = vmatprep.subr.bf16.mxu1 %v3505_v25  ;;  %v116_v5 = vmul.f32 %v3572_v49, %v60_v4  ;;  %v119_v21 = vmul.f32 %v3584_v63, %v60_v4 }
 0x24d   :  { %1338 = vmatpush1.bf16.msra.mxu0 %v3435_v6  ;;  %1379 = vmatpush1.bf16.msra.mxu1 %v3510_v26  ;;  %v117_v6 = vmul.f32 %v3567_v46, %v60_v4 }
 0x24e   :  { %1339 = vmatprep.subr.bf16.mxu0 %v3439_v7  ;;  %1380 = vmatprep.subr.bf16.mxu1 %v3514_v27  ;;  %v170_v7 = vadd.f32 %v3578_v53, %v116_v5  ;;  %v3745_v5 = vld [vmem:[#allocation4 + $0x60] ss:$16 sps:$4 sm:$0xff]  }
 0x251   :  { %1340 = vmatpush1.bf16.msra.mxu0 %v3443_v8  ;;  %1381 = vmatpush1.bf16.msra.mxu1 %v3517_v28  ;;  %v118_v8 = vmul.f32 %v3582_v62, %v60_v4  ;;  %v3743_v4 = vld [vmem:[#allocation4 + $0x6c] ss:$16 sps:$4 sm:$0xff]  }
 0x252   :  { %1341 = vmatprep.subr.bf16.mxu0 %v3447_v9  ;;  %1382 = vmatprep.subr.bf16.mxu1 %v3520_v29  ;;  %v171_v9 = vadd.f32 %v3575_v51, %v117_v6  ;;  %v3747_v6 = vld [vmem:[#allocation4 + $0x68] ss:$16 sps:$4 sm:$0xff]  }
 0x255   :  { %1342 = vmatpush1.bf16.msra.mxu0 %v3451_v10  ;;  %1383 = vmatpush1.bf16.msra.mxu1 %v3523_v30 }
 0x256   :  { %1343 = vmatprep.subr.bf16.mxu0 %v3455_v11  ;;  %1384 = vmatprep.subr.bf16.mxu1 %v3526_v31 }
 0x259   :  { %1344 = vmatpush1.bf16.msra.mxu0 %v3459_v12  ;;  %1385 = vmatpush1.bf16.msra.mxu1 %v3529_v32  ;;  %v173_v32 = vadd.f32 %v3590_v22, %v119_v21  ;;  %v3777_v21 = vld [vmem:[#allocation4 + $0xc4] ss:$16 sps:$4 sm:$0xff]  }
 0x25a   :  { %1345 = vmatprep.subr.bf16.mxu0 %v3463_v13  ;;  %1386 = vmatprep.subr.bf16.mxu1 %v3532_v33  ;;  %v172_v13 = vadd.f32 %v3587_v17, %v118_v8  ;;  %v3755_v8 = vld [vmem:[#allocation4 + $0x8c] ss:$16 sps:$4 sm:$0xff]  }
 0x25d   :  { %1346 = vmatpush1.bf16.msra.mxu0 %v3469_v15  ;;  %1387 = vmatpush1.bf16.msra.mxu1 %v3535_v34 }
 0x25e   :  { %1388 = vmatprep.subr.bf16.mxu1 %v3538_v35  ;;  %1347 = vmatprep.subr.bf16.mxu0 %v3685_v2 }
 0x261   :  { %1389 = vmatpush1.bf16.msra.mxu1 %v3541_v36  ;;  %1348 = vmatpush1.bf16.msra.mxu0 %v3687_v3 }
 0x262   :  { %1637 = vmatprep.subr.bf16.mxu0 %v3705_v41  ;;  %1678 = vmatprep.subr.bf16.mxu1 %v3707_v43 }
 0x317   :  { %v1063_v10 = vpop.f32.mrb[4].mxu0  ;;  %v1104_v11 = vpop.f32.mrb[12].mxu1 }
 0x318   :  { %v1111_v12 = vadd.f32 %v1063_v10, %v170_v7  ;;  %v1065_v15 = vpop.f32.mrb[5].mxu0  ;;  %v1106_v23 = vpop.f32.mrb[13].mxu1  ;;  %v1113_v31 = vadd.f32 %v1104_v11, %v172_v13  ;;  %v3753_v7 = vld [vmem:[#allocation4 + $0x84] ss:$16 sps:$4 sm:$0xff]   ;;  %v3759_v10 = vld [vmem:[#allocation4 + $0x88] ss:$16 sps:$4 sm:$0xff]  }
 0x319   :  { %v1112_v24 = vadd.f32 %v1065_v15, %v171_v9  ;;  %v1067_v25 = vpop.f32.mrb[6].mxu0  ;;  %v1108_v26 = vpop.f32.mrb[14].mxu1  ;;  %v1114_v33 = vadd.f32 %v1106_v23, %v173_v32  ;;  %v3757_v9 = vld [vmem:[#allocation4 + $0x80] ss:$16 sps:$4 sm:$0xff]   ;;  %v3765_v11 = vld [vmem:[#allocation4 + $0xa4] ss:$16 sps:$4 sm:$0xff]  }
 0x31a   :  { %v1115_v27 = vmul.f32 0.5, %v1111_v12  ;;  %v1068_v28 = vpop.f32.mrb[7].mxu0  ;;  %v1109_v29 = vpop.f32.mrb[15].mxu1  ;;  %v3767_v12 = vld [vmem:[#allocation4 + $0xac] ss:$16 sps:$4 sm:$0xff]  }
 0x31b   :  { %v1119_v30 = vmul.f32 0.5, %v1112_v24  ;;  %v1124_v34 = vmul.f32 0.5, %v1114_v33  ;;  %v3769_v13 = vld [vmem:[#allocation4 + $0xa0] ss:$16 sps:$4 sm:$0xff]   ;;  %v3771_v15 = vld [vmem:[#allocation4 + $0xa8] ss:$16 sps:$4 sm:$0xff]   ;;  %v65_v28 = vpop.permute.xlu1 %64 }
 0x31c   :  { %3279 = vtanh.f32 %v1115_v27  ;;  %v3779_v23 = vld [vmem:[#allocation4 + $0xcc] ss:$16 sps:$4 sm:$0xff]   ;;  %v3781_v24 = vld [vmem:[#allocation4 + $0xc0] ss:$16 sps:$4 sm:$0xff]   ;;  %v3783_v25 = vld [vmem:[#allocation4 + $0xc8] ss:$16 sps:$4 sm:$0xff]   ;;  %v120_v29 = vmul.f32 %v3572_v49, %v65_v28  ;;  %v122_v32 = vmul.f32 %v3582_v62, %v65_v28 }
 0x31d   :  { %3281 = vtanh.f32 %v1119_v30  ;;  %v3790_v26 = vld [vmem:[#allocation4 + $0xec] ss:$16 sps:$4 sm:$0xff]   ;;  %v3792_v27 = vld [vmem:[#allocation4 + $0xe8] ss:$16 sps:$4 sm:$0xff]   ;;  %v121_v30 = vmul.f32 %v3567_v46, %v65_v28 }
 0x31e   :  { %3283 = vtanh.f32 %v1113_v31  ;;  %v174_v31 = vadd.f32 %v3578_v53, %v120_v29 }
 0x31f   :  { %3285 = vtanh.f32 %v1124_v34 }
 0x326   :  { %v3280_v35 = vpop.eup %3279 }
 0x327   :  { %v3282_v36 = vpop.eup %3281  ;;  %v1117_v59 = vadd.f32 1.0, %v3280_v35  ;;  %v175_v35 = vadd.f32 %v3575_v51, %v121_v30 }
 0x328   :  { %v1121_v57 = vadd.f32 1.0, %v3282_v36  ;;  %v3284_v60 = vpop.eup %3283 }
 0x329   :  { %v1118_v58 = vmul.f32 0.5, %v1117_v59  ;;  %v3286_v39 = vpop.eup %3285 }
 0x32a   :  { %v1122_v61 = vmul.f32 0.5, %v1121_v57  ;;  %v1126_v38 = vadd.f32 1.0, %v3286_v39  ;;  %v123_v39 = vmul.f32 %v3584_v63, %v65_v28 }
 0x32b   :  { %v1129_v14 = vmul.f32 %v3284_v60, %v1118_v58 }
 0x32c   :  { %v1128_v19 = vmul.f32 %v1122_v61, %v3652_v52  ;;  %v1127_v40 = vmul.f32 0.5, %v1126_v38  ;;  %v3721_v52 = vld [vmem:[#allocation4 + $0x20] ss:$16 sps:$4 sm:$0xff]  }
 0x32e   :  { %v3700_v37 = vadd.f32 %v1129_v14, %v1128_v19  ;;  %v176_v19 = vadd.f32 %v3587_v17, %v122_v32 }
 0x330   :  { %3287 = vtanh.f32 %v3700_v37 }
 0x33a   :  { %v3288_v16 = vpop.eup %3287 }
 0x33b   :  { %v1132_v1 = vmul.f32 %v3288_v16, %v1127_v40 }
 0x33d   :  { %v1133_v20 = vpack.c.bf16 %v1132_v1, %v1132_v1 }
 0x33f   :  { %1135 = vst [vmem:[#allocation3 + $0x8] sm:$0xf] %v1133_v20  ;;  %1366 = vmatmul.mubr.bf16.vlgmr.msra.gmra.mrb[8].mxu0 %v1133_v20  ;;  %1407 = vmatmul.mubr.bf16.vlgmr.msra.gmra.mrb[16].mxu1 %v1133_v20  ;;  %v177_v20 = vadd.f32 %v3590_v22, %v123_v39 }
 0x340   :  { %1669 = vmatprep.mubr.bf16.mxu0 %v3366_v0  ;;  %1710 = vmatprep.mubr.bf16.mxu1 %v3366_v0 }
 0x341   :  { %1638 = vmatpush1.bf16.msra.mxu0 %v3709_v42  ;;  %1679 = vmatpush1.bf16.msra.mxu1 %v3711_v44 }
 0x342   :  { %1639 = vmatprep.subr.bf16.mxu0 %v3717_v18  ;;  %1680 = vmatprep.subr.bf16.mxu1 %v3719_v50 }
 0x345   :  { %1640 = vmatpush1.bf16.msra.mxu0 %v3721_v52  ;;  %1681 = vmatpush1.bf16.msra.mxu1 %v3723_v45 }
 0x346   :  { %1641 = vmatprep.subr.bf16.mxu0 %v3729_v54  ;;  %1682 = vmatprep.subr.bf16.mxu1 %v3731_v56 }
 0x349   :  { %1642 = vmatpush1.bf16.msra.mxu0 %v3733_v55  ;;  %1683 = vmatpush1.bf16.msra.mxu1 %v3735_v47 }
 0x34a   :  { %1643 = vmatprep.subr.bf16.mxu0 %v3741_v48  ;;  %1684 = vmatprep.subr.bf16.mxu1 %v3743_v4 }
 0x34d   :  { %1644 = vmatpush1.bf16.msra.mxu0 %v3745_v5  ;;  %1685 = vmatpush1.bf16.msra.mxu1 %v3747_v6 }
 0x34e   :  { %1645 = vmatprep.subr.bf16.mxu0 %v3753_v7  ;;  %1686 = vmatprep.subr.bf16.mxu1 %v3755_v8 }
 0x351   :  { %1646 = vmatpush1.bf16.msra.mxu0 %v3757_v9  ;;  %1687 = vmatpush1.bf16.msra.mxu1 %v3759_v10 }
 0x352   :  { %1647 = vmatprep.subr.bf16.mxu0 %v3765_v11  ;;  %1688 = vmatprep.subr.bf16.mxu1 %v3767_v12 }
 0x355   :  { %1648 = vmatpush1.bf16.msra.mxu0 %v3769_v13  ;;  %1689 = vmatpush1.bf16.msra.mxu1 %v3771_v15 }
 0x356   :  { %1649 = vmatprep.subr.bf16.mxu0 %v3777_v21  ;;  %1690 = vmatprep.subr.bf16.mxu1 %v3779_v23 }
 0x359   :  { %1650 = vmatpush1.bf16.msra.mxu0 %v3781_v24  ;;  %1691 = vmatpush1.bf16.msra.mxu1 %v3783_v25 }
 0x35a   :  { %1651 = vmatprep.subr.bf16.mxu0 %v3685_v2  ;;  %1692 = vmatprep.subr.bf16.mxu1 %v3790_v26 }
 0x35d   :  { %1652 = vmatpush1.bf16.msra.mxu0 %v3687_v3  ;;  %1693 = vmatpush1.bf16.msra.mxu1 %v3792_v27 }
 0x35e   :  { %1941 = vmatprep.subr.bf16.mxu0 %v3705_v41  ;;  %1982 = vmatprep.subr.bf16.mxu1 %v3707_v43 }
 0x412   :  { %v1367_v33 = vpop.f32.mrb[8].mxu0  ;;  %v1408_v34 = vpop.f32.mrb[16].mxu1 }
 0x413   :  { %v1415_v36 = vadd.f32 %v1367_v33, %v174_v31  ;;  %v1369_v59 = vpop.f32.mrb[9].mxu0  ;;  %v1410_v57 = vpop.f32.mrb[17].mxu1  ;;  %v1417_v1 = vadd.f32 %v1408_v34, %v176_v19 }
 0x414   :  { %v1416_v58 = vadd.f32 %v1369_v59, %v175_v35  ;;  %v1371_v60 = vpop.f32.mrb[10].mxu0  ;;  %v1412_v61 = vpop.f32.mrb[18].mxu1  ;;  %v1418_v29 = vadd.f32 %v1410_v57, %v177_v20 }
 0x415   :  { %v1419_v14 = vmul.f32 0.5, %v1415_v36  ;;  %v1372_v38 = vpop.f32.mrb[11].mxu0  ;;  %v1413_v40 = vpop.f32.mrb[19].mxu1 }
 0x416   :  { %v1423_v16 = vmul.f32 0.5, %v1416_v58  ;;  %v1428_v30 = vmul.f32 0.5, %v1418_v29 }
 0x417   :  { %3289 = vtanh.f32 %v1419_v14 }
 0x418   :  { %3291 = vtanh.f32 %v1423_v16 }
 0x419   :  { %3293 = vtanh.f32 %v1417_v1 }
 0x41a   :  { %3295 = vtanh.f32 %v1428_v30 }
 0x421   :  { %v3290_v31 = vpop.eup %3289 }
 0x422   :  { %v3292_v33 = vpop.eup %3291  ;;  %v1421_v35 = vadd.f32 1.0, %v3290_v31 }
 0x423   :  { %v1425_v59 = vadd.f32 1.0, %v3292_v33  ;;  %v3294_v32 = vpop.eup %3293 }
 0x424   :  { %v1422_v36 = vmul.f32 0.5, %v1421_v35  ;;  %v3296_v34 = vpop.eup %3295 }
 0x425   :  { %v1426_v60 = vmul.f32 0.5, %v1425_v59  ;;  %v1430_v14 = vadd.f32 1.0, %v3296_v34 }
 0x426   :  { %v1433_v28 = vmul.f32 %v3294_v32, %v1422_v36 }
 0x427   :  { %v1432_v61 = vmul.f32 %v1426_v60, %v3700_v37  ;;  %v1431_v19 = vmul.f32 0.5, %v1430_v14  ;;  %v70_v37 = vpop.permute.xlu0 %69 }
 0x428   :  { %v124_v40 = vmul.f32 %v3572_v49, %v70_v37  ;;  %v125_v16 = vmul.f32 %v3567_v46, %v70_v37  ;;  %v126_v20 = vmul.f32 %v3582_v62, %v70_v37  ;;  %v127_v34 = vmul.f32 %v3584_v63, %v70_v37 }
 0x429   :  { %v3808_v58 = vadd.f32 %v1433_v28, %v1432_v61 }
 0x42a   :  { %v178_v1 = vadd.f32 %v3578_v53, %v124_v40  ;;  %v179_v31 = vadd.f32 %v3575_v51, %v125_v16  ;;  %v180_v61 = vadd.f32 %v3587_v17, %v126_v20 }
 0x42b   :  { %3297 = vtanh.f32 %v3808_v58 }
 0x435   :  { %v3298_v57 = vpop.eup %3297 }
 0x436   :  { %v1436_v39 = vmul.f32 %v3298_v57, %v1431_v19 }
 0x438   :  { %v1437_v38 = vpack.c.bf16 %v1436_v39, %v1436_v39 }
 0x43a   :  { %1439 = vst [vmem:[#allocation3 + $0xc] sm:$0xf] %v1437_v38  ;;  %1670 = vmatmul.mubr.bf16.vlgmr.msra.gmra.mrb[12].mxu0 %v1437_v38  ;;  %1711 = vmatmul.mubr.bf16.vlgmr.msra.gmra.mrb[20].mxu1 %v1437_v38  ;;  %v181_v38 = vadd.f32 %v3590_v22, %v127_v34 }
 0x43b   :  { %1942 = vmatpush1.bf16.msra.mxu0 %v3709_v42  ;;  %1983 = vmatpush1.bf16.msra.mxu1 %v3711_v44 }
 0x43c   :  { %1943 = vmatprep.subr.bf16.mxu0 %v3717_v18  ;;  %1984 = vmatprep.subr.bf16.mxu1 %v3719_v50 }
 0x43d   :  { %1973 = vmatprep.mubr.bf16.mxu0 %v3366_v0  ;;  %2014 = vmatprep.mubr.bf16.mxu1 %v3366_v0 }
 0x43f   :  { %1944 = vmatpush1.bf16.msra.mxu0 %v3721_v52  ;;  %1985 = vmatpush1.bf16.msra.mxu1 %v3723_v45 }
 0x440   :  { %1945 = vmatprep.subr.bf16.mxu0 %v3729_v54  ;;  %1986 = vmatprep.subr.bf16.mxu1 %v3731_v56 }
 0x443   :  { %1946 = vmatpush1.bf16.msra.mxu0 %v3733_v55  ;;  %1987 = vmatpush1.bf16.msra.mxu1 %v3735_v47 }
 0x444   :  { %1947 = vmatprep.subr.bf16.mxu0 %v3741_v48  ;;  %1988 = vmatprep.subr.bf16.mxu1 %v3743_v4 }
 0x447   :  { %1948 = vmatpush1.bf16.msra.mxu0 %v3745_v5  ;;  %1989 = vmatpush1.bf16.msra.mxu1 %v3747_v6 }
 0x448   :  { %1949 = vmatprep.subr.bf16.mxu0 %v3753_v7  ;;  %1990 = vmatprep.subr.bf16.mxu1 %v3755_v8 }
 0x44b   :  { %1950 = vmatpush1.bf16.msra.mxu0 %v3757_v9  ;;  %1991 = vmatpush1.bf16.msra.mxu1 %v3759_v10 }
 0x44c   :  { %1951 = vmatprep.subr.bf16.mxu0 %v3765_v11  ;;  %1992 = vmatprep.subr.bf16.mxu1 %v3767_v12 }
 0x44f   :  { %1952 = vmatpush1.bf16.msra.mxu0 %v3769_v13  ;;  %1993 = vmatpush1.bf16.msra.mxu1 %v3771_v15 }
 0x450   :  { %1953 = vmatprep.subr.bf16.mxu0 %v3777_v21  ;;  %1994 = vmatprep.subr.bf16.mxu1 %v3779_v23 }
 0x453   :  { %1954 = vmatpush1.bf16.msra.mxu0 %v3781_v24  ;;  %1995 = vmatpush1.bf16.msra.mxu1 %v3783_v25 }
 0x454   :  { %1955 = vmatprep.subr.bf16.mxu0 %v3685_v2  ;;  %1996 = vmatprep.subr.bf16.mxu1 %v3790_v26 }
 0x457   :  { %1956 = vmatpush1.bf16.msra.mxu0 %v3687_v3  ;;  %1997 = vmatpush1.bf16.msra.mxu1 %v3792_v27 }
 0x458   :  { %2245 = vmatprep.subr.bf16.mxu0 %v3705_v41  ;;  %2286 = vmatprep.subr.bf16.mxu1 %v3707_v43 }
 0x50d   :  { %v1671_v29 = vpop.f32.mrb[12].mxu0  ;;  %v1712_v30 = vpop.f32.mrb[20].mxu1 }
 0x50e   :  { %v1719_v33 = vadd.f32 %v1671_v29, %v178_v1  ;;  %v1673_v35 = vpop.f32.mrb[13].mxu0  ;;  %v1714_v59 = vpop.f32.mrb[21].mxu1  ;;  %v1721_v39 = vadd.f32 %v1712_v30, %v180_v61 }
 0x50f   :  { %v1720_v36 = vadd.f32 %v1673_v35, %v179_v31  ;;  %v1675_v32 = vpop.f32.mrb[14].mxu0  ;;  %v1716_v60 = vpop.f32.mrb[22].mxu1  ;;  %v1722_v40 = vadd.f32 %v1714_v59, %v181_v38 }
 0x510   :  { %v1723_v28 = vmul.f32 0.5, %v1719_v33  ;;  %v1676_v14 = vpop.f32.mrb[15].mxu0  ;;  %v1717_v19 = vpop.f32.mrb[23].mxu1 }
 0x511   :  { %v1727_v57 = vmul.f32 0.5, %v1720_v36  ;;  %v1732_v16 = vmul.f32 0.5, %v1722_v40 }
 0x512   :  { %3299 = vtanh.f32 %v1723_v28 }
 0x513   :  { %3301 = vtanh.f32 %v1727_v57 }
 0x514   :  { %3303 = vtanh.f32 %v1721_v39 }
 0x515   :  { %3305 = vtanh.f32 %v1732_v16 }
 0x51c   :  { %v3300_v1 = vpop.eup %3299 }
 0x51d   :  { %v3302_v29 = vpop.eup %3301  ;;  %v1725_v31 = vadd.f32 1.0, %v3300_v1 }
 0x51e   :  { %v1729_v35 = vadd.f32 1.0, %v3302_v29  ;;  %v3304_v20 = vpop.eup %3303 }
 0x51f   :  { %v1726_v33 = vmul.f32 0.5, %v1725_v31  ;;  %v3306_v30 = vpop.eup %3305 }
 0x520   :  { %v1730_v32 = vmul.f32 0.5, %v1729_v35  ;;  %v1734_v28 = vadd.f32 1.0, %v3306_v30 }
 0x521   :  { %v1737_v37 = vmul.f32 %v3304_v20, %v1726_v33 }
 0x522   :  { %v1736_v60 = vmul.f32 %v1730_v32, %v3808_v58  ;;  %v1735_v61 = vmul.f32 0.5, %v1734_v28  ;;  %v75_v58 = vpop.permute.xlu1 %74 }
 0x523   :  { %v128_v19 = vmul.f32 %v3572_v49, %v75_v58  ;;  %v129_v57 = vmul.f32 %v3567_v46, %v75_v58  ;;  %v130_v38 = vmul.f32 %v3582_v62, %v75_v58  ;;  %v131_v20 = vmul.f32 %v3584_v63, %v75_v58 }
 0x524   :  { %v3854_v36 = vadd.f32 %v1737_v37, %v1736_v60 }
 0x525   :  { %v182_v39 = vadd.f32 %v3578_v53, %v128_v19  ;;  %v183_v16 = vadd.f32 %v3575_v51, %v129_v57  ;;  %v184_v33 = vadd.f32 %v3587_v17, %v130_v38  ;;  %v185_v28 = vadd.f32 %v3590_v22, %v131_v20 }
 0x526   :  { %3307 = vtanh.f32 %v3854_v36 }
 0x530   :  { %v3308_v59 = vpop.eup %3307 }
 0x531   :  { %v1740_v34 = vmul.f32 %v3308_v59, %v1735_v61 }
 0x533   :  { %v1741_v14 = vpack.c.bf16 %v1740_v34, %v1740_v34 }
 0x535   :  { %1743 = vst [vmem:[#allocation3 + $0x10] sm:$0xf] %v1741_v14  ;;  %1974 = vmatmul.mubr.bf16.vlgmr.msra.gmra.mrb[16].mxu0 %v1741_v14  ;;  %2015 = vmatmul.mubr.bf16.vlgmr.msra.gmra.mrb[24].mxu1 %v1741_v14 }
 0x536   :  { %2246 = vmatpush1.bf16.msra.mxu0 %v3709_v42  ;;  %2287 = vmatpush1.bf16.msra.mxu1 %v3711_v44 }
 0x537   :  { %2247 = vmatprep.subr.bf16.mxu0 %v3717_v18  ;;  %2288 = vmatprep.subr.bf16.mxu1 %v3719_v50 }
 0x538   :  { %2277 = vmatprep.mubr.bf16.mxu0 %v3366_v0  ;;  %2318 = vmatprep.mubr.bf16.mxu1 %v3366_v0 }
 0x53a   :  { %2248 = vmatpush1.bf16.msra.mxu0 %v3721_v52  ;;  %2289 = vmatpush1.bf16.msra.mxu1 %v3723_v45 }
 0x53b   :  { %2249 = vmatprep.subr.bf16.mxu0 %v3729_v54  ;;  %2290 = vmatprep.subr.bf16.mxu1 %v3731_v56 }
 0x53e   :  { %2250 = vmatpush1.bf16.msra.mxu0 %v3733_v55  ;;  %2291 = vmatpush1.bf16.msra.mxu1 %v3735_v47 }
 0x53f   :  { %2251 = vmatprep.subr.bf16.mxu0 %v3741_v48  ;;  %2292 = vmatprep.subr.bf16.mxu1 %v3743_v4 }
 0x542   :  { %2252 = vmatpush1.bf16.msra.mxu0 %v3745_v5  ;;  %2293 = vmatpush1.bf16.msra.mxu1 %v3747_v6 }
 0x543   :  { %2253 = vmatprep.subr.bf16.mxu0 %v3753_v7  ;;  %2294 = vmatprep.subr.bf16.mxu1 %v3755_v8 }
 0x546   :  { %2254 = vmatpush1.bf16.msra.mxu0 %v3757_v9  ;;  %2295 = vmatpush1.bf16.msra.mxu1 %v3759_v10 }
 0x547   :  { %2255 = vmatprep.subr.bf16.mxu0 %v3765_v11  ;;  %2296 = vmatprep.subr.bf16.mxu1 %v3767_v12 }
 0x54a   :  { %2256 = vmatpush1.bf16.msra.mxu0 %v3769_v13  ;;  %2297 = vmatpush1.bf16.msra.mxu1 %v3771_v15 }
 0x54b   :  { %2257 = vmatprep.subr.bf16.mxu0 %v3777_v21  ;;  %2298 = vmatprep.subr.bf16.mxu1 %v3779_v23 }
 0x54e   :  { %2258 = vmatpush1.bf16.msra.mxu0 %v3781_v24  ;;  %2299 = vmatpush1.bf16.msra.mxu1 %v3783_v25 }
 0x54f   :  { %2259 = vmatprep.subr.bf16.mxu0 %v3685_v2  ;;  %2300 = vmatprep.subr.bf16.mxu1 %v3790_v26 }
 0x552   :  { %2260 = vmatpush1.bf16.msra.mxu0 %v3687_v3  ;;  %2301 = vmatpush1.bf16.msra.mxu1 %v3792_v27 }
 0x553   :  { %2549 = vmatprep.subr.bf16.mxu0 %v3705_v41  ;;  %2590 = vmatprep.subr.bf16.mxu1 %v3707_v43 }
 0x608   :  { %v1975_v2 = vpop.f32.mrb[16].mxu0  ;;  %v2016_v40 = vpop.f32.mrb[24].mxu1 }
 0x609   :  { %v2023_v3 = vadd.f32 %v1975_v2, %v182_v39  ;;  %v1977_v1 = vpop.f32.mrb[17].mxu0  ;;  %v2018_v29 = vpop.f32.mrb[25].mxu1  ;;  %v2025_v30 = vadd.f32 %v2016_v40, %v184_v33 }
 0x60a   :  { %v2024_v31 = vadd.f32 %v1977_v1, %v183_v16  ;;  %v1979_v41 = vpop.f32.mrb[18].mxu0  ;;  %v2020_v35 = vpop.f32.mrb[26].mxu1  ;;  %v2026_v61 = vadd.f32 %v2018_v29, %v185_v28 }
 0x60b   :  { %v2027_v43 = vmul.f32 0.5, %v2023_v3  ;;  %v1980_v32 = vpop.f32.mrb[19].mxu0  ;;  %v2021_v37 = vpop.f32.mrb[27].mxu1 }
 0x60c   :  { %v2031_v60 = vmul.f32 0.5, %v2024_v31  ;;  %v2036_v59 = vmul.f32 0.5, %v2026_v61 }
 0x60d   :  { %3309 = vtanh.f32 %v2027_v43 }
 0x60e   :  { %3311 = vtanh.f32 %v2031_v60 }
 0x60f   :  { %3313 = vtanh.f32 %v2025_v30 }
 0x610   :  { %3315 = vtanh.f32 %v2036_v59 }
 0x617   :  { %v3310_v34 = vpop.eup %3309 }
 0x618   :  { %v3312_v14 = vpop.eup %3311  ;;  %v2029_v19 = vadd.f32 1.0, %v3310_v34 }
 0x619   :  { %v2033_v57 = vadd.f32 1.0, %v3312_v14  ;;  %v3314_v38 = vpop.eup %3313 }
 0x61a   :  { %v2030_v39 = vmul.f32 0.5, %v2029_v19  ;;  %v3316_v40 = vpop.eup %3315 }
 0x61b   :  { %v2034_v2 = vmul.f32 0.5, %v2033_v57  ;;  %v2038_v1 = vadd.f32 1.0, %v3316_v40  ;;  %v3249_v57 = vld [vmem:[%s4009_s4 + $0x8] sm:$0xff]   ;;  %v3255_v40 = vld [vmem:[%s4009_s4 + $0x38] sm:$0xff]  }
 0x61c   :  { %v2041_v58 = vmul.f32 %v3314_v38, %v2030_v39  ;;  %v3248_v39 = vld [vmem:[#allocation3] sm:$0xff]   ;;  %v3250_v38 = vld [vmem:[%s4009_s4 + $0x10] sm:$0xff]  }
 0x61d   :  { %v2040_v16 = vmul.f32 %v2034_v2, %v3854_v36  ;;  %v2039_v31 = vmul.f32 0.5, %v2038_v1  ;;  %v3251_v2 = vld [vmem:[%s4009_s4 + $0x18] sm:$0xff]   ;;  %v3256_v1 = vld [vmem:[#allocation3 + $0x8] sm:$0xff]  }
 0x61f   :  { %v3900_v3 = vadd.f32 %v2041_v58, %v2040_v16  ;;  %v3252_v58 = vld [vmem:[%s4009_s4 + $0x20] sm:$0xff]   ;;  %v3253_v16 = vld [vmem:[%s4009_s4 + $0x28] sm:$0xff]  }
 0x621   :  { %3317 = vtanh.f32 %v3900_v3 }
 0x62b   :  { %v3318_v29 = vpop.eup %3317 }
 0x62c   :  { %v2044_v41 = vmul.f32 %v3318_v29, %v2039_v31  ;;  %v85_v29 = vpop.permute.xlu1 %84 }
 0x62e   :  { %v2045_v35 = vpack.c.bf16 %v2044_v41, %v2044_v41  ;;  %v136_v41 = vmul.f32 %v3572_v49, %v85_v29 }
 0x630   :  { %2047 = vst [vmem:[#allocation3 + $0x14] sm:$0xf] %v2045_v35  ;;  %2278 = vmatmul.mubr.bf16.vlgmr.msra.gmra.mrb[20].mxu0 %v2045_v35  ;;  %2319 = vmatmul.mubr.bf16.vlgmr.msra.gmra.mrb[28].mxu1 %v2045_v35  ;;  %v137_v35 = vmul.f32 %v3567_v46, %v85_v29 }
 0x631   :  { %2550 = vmatpush1.bf16.msra.mxu0 %v3709_v42  ;;  %2591 = vmatpush1.bf16.msra.mxu1 %v3711_v44  ;;  %v3244_v42 = vld [vmem:[#allocation4 + $0xe0] ss:$16 sps:$4 sm:$0xff]  }
 0x632   :  { %2551 = vmatprep.subr.bf16.mxu0 %v3717_v18  ;;  %2592 = vmatprep.subr.bf16.mxu1 %v3719_v50  ;;  %v3247_v44 = vld [vmem:[%s4009_s4] sm:$0xff]   ;;  %v80_v18 = vpop.permute.xlu0 %79 }
 0x633   :  { %2581 = vmatprep.mubr.bf16.mxu0 %v3366_v0  ;;  %2622 = vmatprep.mubr.bf16.mxu1 %v3366_v0  ;;  %v3246_v0 = vld [vmem:[#allocation4 + $0xe4] ss:$16 sps:$4 sm:$0xff]   ;;  %v132_v50 = vmul.f32 %v3572_v49, %v80_v18 }
 0x635   :  { %2552 = vmatpush1.bf16.msra.mxu0 %v3721_v52  ;;  %2593 = vmatpush1.bf16.msra.mxu1 %v3723_v45  ;;  %v133_v52 = vmul.f32 %v3567_v46, %v80_v18  ;;  %v134_v45 = vmul.f32 %v3582_v62, %v80_v18 }
 0x636   :  { %2553 = vmatprep.subr.bf16.mxu0 %v3729_v54  ;;  %2594 = vmatprep.subr.bf16.mxu1 %v3731_v56  ;;  %v186_v54 = vadd.f32 %v3578_v53, %v132_v50  ;;  %v191_v50 = vadd.f32 %v3575_v51, %v137_v35 }
 0x637   :  { %v3257_v31 = vld [vmem:[#allocation3 + $0x10] sm:$0xff]  }
 0x639   :  { %2554 = vmatpush1.bf16.msra.mxu0 %v3733_v55  ;;  %2595 = vmatpush1.bf16.msra.mxu1 %v3735_v47  ;;  %v187_v47 = vadd.f32 %v3575_v51, %v133_v52 }
 0x63a   :  { %2555 = vmatprep.subr.bf16.mxu0 %v3741_v48  ;;  %2596 = vmatprep.subr.bf16.mxu1 %v3743_v4 }
 0x63d   :  { %2556 = vmatpush1.bf16.msra.mxu0 %v3745_v5  ;;  %2597 = vmatpush1.bf16.msra.mxu1 %v3747_v6 }
 0x63e   :  { %2557 = vmatprep.subr.bf16.mxu0 %v3753_v7  ;;  %2598 = vmatprep.subr.bf16.mxu1 %v3755_v8 }
 0x641   :  { %2558 = vmatpush1.bf16.msra.mxu0 %v3757_v9  ;;  %2599 = vmatpush1.bf16.msra.mxu1 %v3759_v10  ;;  %v135_v9 = vmul.f32 %v3584_v63, %v80_v18 }
 0x642   :  { %2559 = vmatprep.subr.bf16.mxu0 %v3765_v11  ;;  %2600 = vmatprep.subr.bf16.mxu1 %v3767_v12  ;;  %v188_v11 = vadd.f32 %v3587_v17, %v134_v45 }
 0x645   :  { %2560 = vmatpush1.bf16.msra.mxu0 %v3769_v13  ;;  %2601 = vmatpush1.bf16.msra.mxu1 %v3771_v15 }
 0x646   :  { %2561 = vmatprep.subr.bf16.mxu0 %v3777_v21  ;;  %2602 = vmatprep.subr.bf16.mxu1 %v3779_v23  ;;  %v189_v23 = vadd.f32 %v3590_v22, %v135_v9 }
 0x649   :  { %2562 = vmatpush1.bf16.msra.mxu0 %v3781_v24  ;;  %2603 = vmatpush1.bf16.msra.mxu1 %v3783_v25 }
 0x64a   :  { %2604 = vmatprep.subr.bf16.mxu1 %v3790_v26  ;;  %2563 = vmatprep.subr.bf16.mxu0 %v3246_v0  ;;  %v138_v0 = vmul.f32 %v3582_v62, %v85_v29 }
 0x64c   :  { %v192_v49 = vadd.f32 %v3587_v17, %v138_v0 }
 0x64d   :  { %2605 = vmatpush1.bf16.msra.mxu1 %v3792_v27  ;;  %2564 = vmatpush1.bf16.msra.mxu0 %v3244_v42  ;;  %v190_v42 = vadd.f32 %v3578_v53, %v136_v41 }
 0x64e   :  { %3118 = vmatprep.subr.bf16.mxu0 %v3247_v44 }
 0x703   :  { %v2279_v56 = vpop.f32.mrb[20].mxu0  ;;  %v2320_v55 = vpop.f32.mrb[28].mxu1 }
 0x704   :  { %v2327_v48 = vadd.f32 %v2279_v56, %v186_v54  ;;  %v2281_v4 = vpop.f32.mrb[21].mxu0  ;;  %v2322_v5 = vpop.f32.mrb[29].mxu1  ;;  %v2329_v21 = vadd.f32 %v2320_v55, %v188_v11 }
 0x705   :  { %v2328_v6 = vadd.f32 %v2281_v4, %v187_v47  ;;  %v2283_v7 = vpop.f32.mrb[22].mxu0  ;;  %v2324_v8 = vpop.f32.mrb[30].mxu1  ;;  %v2330_v24 = vadd.f32 %v2322_v5, %v189_v23 }
 0x706   :  { %v2331_v10 = vmul.f32 0.5, %v2327_v48  ;;  %v2284_v12 = vpop.f32.mrb[23].mxu0  ;;  %v2325_v13 = vpop.f32.mrb[31].mxu1  ;;  %v139_v48 = vmul.f32 %v3584_v63, %v85_v29 }
 0x707   :  { %v2335_v15 = vmul.f32 0.5, %v2328_v6  ;;  %v2340_v25 = vmul.f32 0.5, %v2330_v24 }
 0x708   :  { %3319 = vtanh.f32 %v2331_v10  ;;  %v193_v6 = vadd.f32 %v3590_v22, %v139_v48  ;;  %v3093_v22 = vld [vmem:[%s4010_s5] ss:$0 sm:$0xff] }
 0x709   :  { %3321 = vtanh.f32 %v2335_v15 }
 0x70a   :  { %3323 = vtanh.f32 %v2329_v21 }
 0x70b   :  { %3325 = vtanh.f32 %v2340_v25 }
 0x712   :  { %v3320_v26 = vpop.eup %3319 }
 0x713   :  { %v3322_v27 = vpop.eup %3321  ;;  %v2333_v36 = vadd.f32 1.0, %v3320_v26 }
 0x714   :  { %v2337_v43 = vadd.f32 1.0, %v3322_v27  ;;  %v3324_v20 = vpop.eup %3323 }
 0x715   :  { %v2334_v33 = vmul.f32 0.5, %v2333_v36  ;;  %v3326_v28 = vpop.eup %3325 }
 0x716   :  { %v2338_v32 = vmul.f32 0.5, %v2337_v43  ;;  %v2342_v61 = vadd.f32 1.0, %v3326_v28 }
 0x717   :  { %v2345_v37 = vmul.f32 %v3324_v20, %v2334_v33 }
 0x718   :  { %v2344_v60 = vmul.f32 %v2338_v32, %v3900_v3  ;;  %v2343_v59 = vmul.f32 0.5, %v2342_v61  ;;  %v3254_v3 = vld [vmem:[%s4009_s4 + $0x30] sm:$0xff]  }
 0x71a   :  { %v3945_v30 = vadd.f32 %v2345_v37, %v2344_v60 }
 0x71c   :  { %3327 = vtanh.f32 %v3945_v30 }
 0x726   :  { %v3328_v34 = vpop.eup %3327 }
 0x727   :  { %v2348_v14 = vmul.f32 %v3328_v34, %v2343_v59 }
 0x729   :  { %v2349_v19 = vpack.c.bf16 %v2348_v14, %v2348_v14 }
 0x72b   :  { %2351 = vst [vmem:[#allocation3 + $0x18] sm:$0xf] %v2349_v19  ;;  %2582 = vmatmul.mubr.bf16.vlgmr.msra.gmra.mrb[24].mxu0 %v2349_v19  ;;  %2623 = vmatmul.mubr.bf16.vlgmr.msra.gmra.mrb[32].mxu1 %v2349_v19 }
 0x72c   :  { %3119 = vmatpush3.bf16.msra.mxu0 %v3247_v44  ;;  %3134 = vmatprep.mubr.bf16.mxu0 %v3248_v39 }
 0x72d   :  { %3120 = vmatprep.subr.bf16.mxu0 %v3249_v57 }
 0x730   :  { %3121 = vmatpush3.bf16.msra.mxu0 %v3249_v57 }
 0x731   :  { %3122 = vmatprep.subr.bf16.mxu0 %v3250_v38 }
 0x734   :  { %3123 = vmatpush3.bf16.msra.mxu0 %v3250_v38 }
 0x735   :  { %3124 = vmatprep.subr.bf16.mxu0 %v3251_v2 }
 0x738   :  { %3125 = vmatpush3.bf16.msra.mxu0 %v3251_v2 }
 0x739   :  { %3126 = vmatprep.subr.bf16.mxu0 %v3252_v58 }
 0x73c   :  { %3127 = vmatpush3.bf16.msra.mxu0 %v3252_v58 }
 0x73d   :  { %3128 = vmatprep.subr.bf16.mxu0 %v3253_v16 }
 0x740   :  { %3129 = vmatpush3.bf16.msra.mxu0 %v3253_v16 }
 0x741   :  { %3130 = vmatprep.subr.bf16.mxu0 %v3254_v3 }
 0x744   :  { %3131 = vmatpush3.bf16.msra.mxu0 %v3254_v3 }
 0x745   :  { %3132 = vmatprep.subr.bf16.mxu0 %v3255_v40 }
 0x748   :  { %3133 = vmatpush3.bf16.msra.mxu0 %v3255_v40 }
 0x74b   :  { %3135 = vmatmul.mubr.bf16.vlgmr.msra.gmra.mrb[28].mxu0 %v3256_v1 }
 0x74c   :  { %3138 = vmatprep.mubr.bf16.mxu0 %v3257_v31 }
 0x7fe   :  { %v2583_v44 = vpop.f32.mrb[24].mxu0  ;;  %v2624_v18 = vpop.f32.mrb[32].mxu1 }
 0x7ff   :  { %v2631_v52 = vadd.f32 %v2583_v44, %v190_v42  ;;  %v2585_v45 = vpop.f32.mrb[25].mxu0  ;;  %v2626_v54 = vpop.f32.mrb[33].mxu1  ;;  %v2633_v53 = vadd.f32 %v2624_v18, %v192_v49 }
 0x800   :  { %v2632_v56 = vadd.f32 %v2585_v45, %v191_v50  ;;  %v2587_v55 = vpop.f32.mrb[26].mxu0  ;;  %v2628_v47 = vpop.f32.mrb[34].mxu1  ;;  %v2634_v51 = vadd.f32 %v2626_v54, %v193_v6 }
 0x801   :  { %v2635_v4 = vmul.f32 0.5, %v2631_v52  ;;  %v2588_v46 = vpop.f32.mrb[27].mxu0  ;;  %v2629_v5 = vpop.f32.mrb[35].mxu1 }
 0x802   :  { %v2639_v62 = vmul.f32 0.5, %v2632_v56  ;;  %v2644_v7 = vmul.f32 0.5, %v2634_v51 }
 0x803   :  { %3329 = vtanh.f32 %v2635_v4 }
 0x804   :  { %3331 = vtanh.f32 %v2639_v62 }
 0x805   :  { %3333 = vtanh.f32 %v2633_v53 }
 0x806   :  { %3335 = vtanh.f32 %v2644_v7 }
 0x80d   :  { %v3330_v8 = vpop.eup %3329 }
 0x80e   :  { %v3332_v9 = vpop.eup %3331  ;;  %v2637_v10 = vadd.f32 1.0, %v3330_v8 }
 0x80f   :  { %v2641_v11 = vadd.f32 1.0, %v3332_v9  ;;  %v3334_v12 = vpop.eup %3333 }
 0x810   :  { %v2638_v63 = vmul.f32 0.5, %v2637_v10  ;;  %v3336_v23 = vpop.eup %3335 }
 0x811   :  { %v2642_v13 = vmul.f32 0.5, %v2641_v11  ;;  %v2646_v24 = vadd.f32 1.0, %v3336_v23 }
 0x812   :  { %v2649_v17 = vmul.f32 %v3334_v12, %v2638_v63 }
 0x813   :  { %v2648_v15 = vmul.f32 %v2642_v13, %v3945_v30  ;;  %v2647_v36 = vmul.f32 0.5, %v2646_v24 }
 0x815   :  { %v2650_v21 = vadd.f32 %v2649_v17, %v2648_v15 }
 0x817   :  { %3337 = vtanh.f32 %v2650_v21 }
 0x81e   :  { %v3136_v25 = vpop.f32.mrb[28].mxu0 }
 0x81f   :  { %v2802_v26 = vadd.f32 %v3136_v25, %v3093_v22  ;;  %v2793_v27 = vpop.f32.mrb[29].mxu0 }
 0x820   :  { %v2794_v43 = vadd.f32 %v3093_v22, %v2793_v27  ;;  %v3137_v33 = vpop.f32.mrb[30].mxu0 }
 0x821   :  { %v3338_v20 = vpop.eup %3337  ;;  %2826 = vst [vmem:[%s4011_s6 + $0x10] sm:$0xff] %v2802_v26  ;;  %v2805_v32 = vadd.f32 %v3137_v33, %v3093_v22  ;;  %v2796_v37 = vpop.f32.mrb[31].mxu0 }
 0x822   :  { %v2652_v60 = vmul.f32 %v3338_v20, %v2647_v36  ;;  %2824 = vst [vmem:[%s4011_s6] sm:$0xff] %v2794_v43  ;;  %v2797_v30 = vadd.f32 %v3093_v22, %v2796_v37 }
 0x823   :  { %2827 = vst [vmem:[%s4011_s6 + $0x18] sm:$0xff] %v2805_v32 }
 0x824   :  { %v2653_v28 = vpack.c.bf16 %v2652_v60, %v2652_v60  ;;  %2825 = vst [vmem:[%s4011_s6 + $0x8] sm:$0xff] %v2797_v30 }
 0x826   :  { %2655 = vst [vmem:[#allocation3 + $0x1c] sm:$0xf] %v2653_v28 }
 0x82d   :  { %v3258_v61 = vld [vmem:[#allocation3 + $0x18] sm:$0xff]  }
 0x82e   :  { %3139 = vmatmul.mubr.bf16.gmra.mrb[32].mxu0 %v3258_v61 }
 0x901   :  { %v3140_v59 = vpop.f32.mrb[32].mxu0 }
 0x902   :  { %v2818_v34 = vadd.f32 %v3140_v59, %v3093_v22  ;;  %v2809_v14 = vpop.f32.mrb[33].mxu0 }
 0x903   :  { %v2810_v19 = vadd.f32 %v3093_v22, %v2809_v14  ;;  %v3141_v57 = vpop.f32.mrb[34].mxu0 }
 0x904   :  { %2830 = vst [vmem:[%s4011_s6 + $0x30] sm:$0xff] %v2818_v34  ;;  %v2821_v39 = vadd.f32 %v3141_v57, %v3093_v22  ;;  %v2812_v38 = vpop.f32.mrb[35].mxu0 }
 0x905   :  { %2828 = vst [vmem:[%s4011_s6 + $0x20] sm:$0xff] %v2810_v19  ;;  %v2813_v2 = vadd.f32 %v3093_v22, %v2812_v38 }
 0x906   :  { %2831 = vst [vmem:[%s4011_s6 + $0x38] sm:$0xff] %v2821_v39 }
 0x907   :  { %2829 = vst [vmem:[%s4011_s6 + $0x28] sm:$0xff] %v2813_v2 }
 0x908   :  { %2836 = vsyncpa [#allocation5], 1 }

</bundles_post_ra>
